<compile_context>
chip_gen: v6e
topology: v6e:2x2x1
jax: 0.10.0
libtpu: 0.0.40
codegen_flags: <defaults>
</compile_context>

<pallas_src>
import math
import functools

import jax
import jax.numpy as jnp
from jax.experimental import pallas as pl
from jax.experimental.pallas import tpu as pltpu

# ----------------------------- model hyper-params ---------------------------
NTOKEN = 100
NINP = 64            # d_model
NHEAD = 2
NHID = 200           # dim_feedforward (logical)
NHID_PAD = 256       # padded to a clean lane multiple
NLAYERS = 2
HEAD_DIM = NINP // NHEAD
LN_EPS = 1e-5
NEG_INF = -1e9


# ----------------------------- fused Pallas kernel ---------------------------
def fused_transformer_kernel(
    ids_ref,      # (B*S, 1)  int32   token ids (batch-major flattening)
    emb_ref,      # (NTOKEN, D) f32   embedding table
    pe_ref,       # (B*S, D)  f32     positional encoding, tiled per batch
    mask_ref,     # (S, S)    f32     additive causal mask
    w_in_ref,     # (L, D, 3D)  bf16  in_proj weights (pre-transposed)
    b_in_ref,     # (L, 1, 3D)  f32
    w_o_ref,      # (L, D, D)   bf16  out_proj weights (pre-transposed)
    b_o_ref,      # (L, 1, D)   f32
    g1_ref,       # (L, 1, D)   f32   LayerNorm1 gamma
    be1_ref,      # (L, 1, D)   f32   LayerNorm1 beta
    w1_ref,       # (L, D, Hp)  bf16  linear1 (pre-transposed, zero-padded)
    bb1_ref,      # (L, 1, Hp)  f32
    w2_ref,       # (L, Hp, D)  bf16  linear2 (pre-transposed, zero-padded)
    bb2_ref,      # (L, 1, D)   f32
    g2_ref,       # (L, 1, D)   f32   LayerNorm2 gamma
    be2_ref,      # (L, 1, D)   f32   LayerNorm2 beta
    dec_w_ref,    # (1, D)      f32   decoder weight row
    dec_b_ref,    # (1, 1)      f32   decoder bias
    o_ref,        # (B*S, 1)    f32   output
    attn_ref,     # scratch VMEM (B*S, D) f32
    *, batch, seq,
):
    bs = batch * seq

    # ---- embedding gather as an exact one-hot matmul (kept in f32) ----
    ids = ids_ref[...]                                           # (BS, 1) i32
    tok = jax.lax.broadcasted_iota(jnp.int32, (bs, NTOKEN), 1)   # (BS, NTOKEN)
    one_hot = (tok == ids).astype(jnp.float32)
    x = jnp.dot(one_hot, emb_ref[...], preferred_element_type=jnp.float32)

    # ---- PositionalEncoding.forward: x*sqrt(d_model) + pe (dropout = identity) ----
    x = x * math.sqrt(NINP) + pe_ref[...]                        # (BS, D) f32

    mask = mask_ref[...]                                         # (S, S)
    scale = 1.0 / math.sqrt(HEAD_DIM)

    for l in range(NLAYERS):                                     # static, NLAYERS=2
        # ---- multi-head self-attention (batch flattened into M) ----
        qkv = jnp.dot(x.astype(jnp.bfloat16), w_in_ref[l],
                      preferred_element_type=jnp.float32) + b_in_ref[l]  # (BS, 3D)
        q = qkv[:, :NINP]
        k = qkv[:, NINP:2 * NINP]
        v = qkv[:, 2 * NINP:]

        for b in range(batch):                                   # static loops
            rows = slice(b * seq, (b + 1) * seq)
            for h in range(NHEAD):
                cols = slice(h * HEAD_DIM, (h + 1) * HEAD_DIM)
                qh = q[rows, cols].astype(jnp.bfloat16)
                kh = k[rows, cols].astype(jnp.bfloat16)
                vh = v[rows, cols].astype(jnp.bfloat16)
                s = jnp.dot(qh, kh.T, preferred_element_type=jnp.float32)
                s = s * scale + mask
                s = s - jnp.max(s, axis=-1, keepdims=True)
                p = jnp.exp(s)
                p = p * pl.reciprocal(jnp.sum(p, axis=-1, keepdims=True),
                                      approx=True)
                attn_ref[rows, cols] = jnp.dot(
                    p.astype(jnp.bfloat16), vh,
                    preferred_element_type=jnp.float32)

        attn = jnp.dot(attn_ref[...].astype(jnp.bfloat16), w_o_ref[l],
                       preferred_element_type=jnp.float32) + b_o_ref[l]

        # ---- residual + LayerNorm1 (post-norm), f32 ----
        x1 = x + attn
        mu = jnp.mean(x1, axis=-1, keepdims=True)
        var = jnp.mean((x1 - mu) ** 2, axis=-1, keepdims=True)
        x1 = (x1 - mu) * jax.lax.rsqrt(var + LN_EPS) * g1_ref[l] + be1_ref[l]

        # ---- feed-forward (ReLU), padded hidden dim ----
        ff = jnp.dot(x1.astype(jnp.bfloat16), w1_ref[l],
                     preferred_element_type=jnp.float32) + bb1_ref[l]
        ff = jnp.maximum(ff, 0.0)
        ff = jnp.dot(ff.astype(jnp.bfloat16), w2_ref[l],
                     preferred_element_type=jnp.float32) + bb2_ref[l]

        # ---- residual + LayerNorm2, f32 ----
        x2 = x1 + ff
        mu2 = jnp.mean(x2, axis=-1, keepdims=True)
        var2 = jnp.mean((x2 - mu2) ** 2, axis=-1, keepdims=True)
        x = (x2 - mu2) * jax.lax.rsqrt(var2 + LN_EPS) * g2_ref[l] + be2_ref[l]

    # ---- decoder: VPU multiply + lane reduction (no N=1 MXU matmul) ----
    o_ref[...] = (jnp.sum(x * dec_w_ref[...], axis=-1, keepdims=True)
                  + dec_b_ref[...])


# ----------------------------- glue (plain JAX) ------------------------------
def positional_encoding(seq_len, d_model):
    position = jnp.arange(seq_len, dtype=jnp.float32)[:, None]
    div_term = jnp.exp(jnp.arange(0, d_model, 2, dtype=jnp.float32)
                       * (-math.log(10000.0) / d_model))
    pe = jnp.zeros((seq_len, d_model), jnp.float32)
    pe = pe.at[:, 0::2].set(jnp.sin(position * div_term))
    pe = pe.at[:, 1::2].set(jnp.cos(position * div_term))
    return pe                                                    # (S, D)


def causal_mask(sz):
    # generate_square_subsequent_mask: 0 on/below diag, -inf (−1e9) above
    allowed = jnp.tril(jnp.ones((sz, sz), jnp.bool_))
    return jnp.where(allowed, 0.0, NEG_INF).astype(jnp.float32)


def init_params(key):
    ks = jax.random.split(key, 4 + NLAYERS)
    initrange = 0.1

    def u(k, shape, bound):
        return jax.random.uniform(k, shape, jnp.float32, -bound, bound)

    params = {
        "emb": jax.random.uniform(ks[0], (NTOKEN, NINP), jnp.float32,
                                  -initrange, initrange),
        "dec_w": jax.random.uniform(ks[1], (1, NINP), jnp.float32,
                                    -initrange, initrange),
        "dec_b": jnp.zeros((1, 1), jnp.float32),
        "layers": [],
    }
    d_bound = 1.0 / math.sqrt(NINP)
    h_bound = 1.0 / math.sqrt(NHID)
    for l in range(NLAYERS):
        lk = jax.random.split(ks[4 + l], 8)
        params["layers"].append({
            "w_in": u(lk[0], (NINP, 3 * NINP), d_bound),  # stored transposed
            "b_in": jnp.zeros((1, 3 * NINP), jnp.float32),
            "w_o": u(lk[1], (NINP, NINP), d_bound),
            "b_o": jnp.zeros((1, NINP), jnp.float32),
            "ln1_g": jnp.ones((1, NINP), jnp.float32),
            "ln1_b": jnp.zeros((1, NINP), jnp.float32),
            "w1": u(lk[2], (NINP, NHID), d_bound),
            "b1": u(lk[3], (1, NHID), d_bound),
            "w2": u(lk[4], (NHID, NINP), h_bound),
            "b2": u(lk[5], (1, NINP), h_bound),
            "ln2_g": jnp.ones((1, NINP), jnp.float32),
            "ln2_b": jnp.zeros((1, NINP), jnp.float32),
        })
    return params


def prepare_kernel_params(params):
    """Stack per-layer weights on a leading layer axis, zero-pad NHID->256,
    and cast matmul weights to bf16 (done once, at parameter-prep time)."""
    layers = params["layers"]

    def stack(name):
        return jnp.stack([lp[name] for lp in layers], axis=0)

    pad = NHID_PAD - NHID
    w1 = jnp.pad(stack("w1"), ((0, 0), (0, 0), (0, pad)))
    b1 = jnp.pad(stack("b1"), ((0, 0), (0, 0), (0, pad)))
    w2 = jnp.pad(stack("w2"), ((0, 0), (0, pad), (0, 0)))

    return {
        "emb": params["emb"],                       # f32 (gather must be exact)
        "dec_w": params["dec_w"],                   # (1, D) f32
        "dec_b": params["dec_b"],                   # (1, 1) f32
        "w_in": stack("w_in").astype(jnp.bfloat16),
        "b_in": stack("b_in"),
        "w_o": stack("w_o").astype(jnp.bfloat16),
        "b_o": stack("b_o"),
        "ln1_g": stack("ln1_g"), "ln1_b": stack("ln1_b"),
        "w1": w1.astype(jnp.bfloat16), "b1": b1,
        "w2": w2.astype(jnp.bfloat16), "b2": stack("b2"),
        "ln2_g": stack("ln2_g"), "ln2_b": stack("ln2_b"),
    }


@jax.jit
def transformer_forward(src_tokens, kp):
    # src_tokens: (S, B) int32, PyTorch (seq, batch) convention.
    S, B = src_tokens.shape
    ids = jnp.transpose(src_tokens, (1, 0)).reshape(B * S, 1).astype(jnp.int32)
    pe = jnp.tile(positional_encoding(S, NINP), (B, 1))          # (B*S, D)
    mask = causal_mask(S)

    kernel = functools.partial(fused_transformer_kernel, batch=B, seq=S)
    out = pl.pallas_call(
        kernel,
        out_shape=jax.ShapeDtypeStruct((B * S, 1), jnp.float32),
        scratch_shapes=[pltpu.VMEM((B * S, NINP), jnp.float32)],
    )(ids, kp["emb"], pe, mask,
      kp["w_in"], kp["b_in"], kp["w_o"], kp["b_o"],
      kp["ln1_g"], kp["ln1_b"], kp["w1"], kp["b1"], kp["w2"], kp["b2"],
      kp["ln2_g"], kp["ln2_b"], kp["dec_w"], kp["dec_b"])

    return jnp.transpose(out.reshape(B, S), (1, 0))              # (S, B)


# ----------------------------- main ------------------------------------------
if __name__ == "__main__":
    key = jax.random.PRNGKey(0)
    pkey, dkey = jax.random.split(key)
    params = init_params(pkey)
    kparams = prepare_kernel_params(params)

    S, B = 8, 2
    src = jax.random.randint(dkey, (S, B), 0, NTOKEN, dtype=jnp.int32)

    out = transformer_forward(src, kparams)
    out = jax.block_until_ready(out)
    assert out.shape == (S, B), out.shape
    assert bool(jnp.all(jnp.isfinite(out)))
    print("KERNEL_OK")
</pallas_src>

<mosaic_0001>
module attributes {stable_mosaic.version = 11 : i64} {
  func.func @fused_transformer_kernel(%arg0: memref<16x1xi32, #tpu.memory_space<vmem>>, %arg1: memref<100x64xf32, #tpu.memory_space<vmem>>, %arg2: memref<16x64xf32, #tpu.memory_space<vmem>>, %arg3: memref<8x8xf32, #tpu.memory_space<vmem>>, %arg4: memref<2x64x192xbf16, #tpu.memory_space<vmem>>, %arg5: memref<2x1x192xf32, #tpu.memory_space<vmem>>, %arg6: memref<2x64x64xbf16, #tpu.memory_space<vmem>>, %arg7: memref<2x1x64xf32, #tpu.memory_space<vmem>>, %arg8: memref<2x1x64xf32, #tpu.memory_space<vmem>>, %arg9: memref<2x1x64xf32, #tpu.memory_space<vmem>>, %arg10: memref<2x64x256xbf16, #tpu.memory_space<vmem>>, %arg11: memref<2x1x256xf32, #tpu.memory_space<vmem>>, %arg12: memref<2x256x64xbf16, #tpu.memory_space<vmem>>, %arg13: memref<2x1x64xf32, #tpu.memory_space<vmem>>, %arg14: memref<2x1x64xf32, #tpu.memory_space<vmem>>, %arg15: memref<2x1x64xf32, #tpu.memory_space<vmem>>, %arg16: memref<1x64xf32, #tpu.memory_space<vmem>>, %arg17: memref<1x1xf32, #tpu.memory_space<vmem>>, %arg18: memref<16x1xf32, #tpu.memory_space<vmem>>, %arg19: memref<16x64xf32, #tpu.memory_space<vmem>>) attributes {dimension_semantics = [], scalar_prefetch = 0 : i64, scratch_operands = 1 : i64, tpu.core_type = #tpu.core_type<tc>} {
    %c0 = arith.constant 0 : index
    %c0_0 = arith.constant 0 : index
    %0 = vector.load %arg0[%c0, %c0_0] : memref<16x1xi32, #tpu.memory_space<vmem>>, vector<16x1xi32>
    %1 = tpu.iota {dimensions = array<i32: 1>} : vector<16x100xi32>
    %2 = vector.broadcast %0 : vector<16x1xi32> to vector<16x100xi32>
    %3 = arith.cmpi eq, %1, %2 : vector<16x100xi32>
    %4 = arith.extui %3 : vector<16x100xi1> to vector<16x100xi32>
    %5 = arith.sitofp %4 : vector<16x100xi32> to vector<16x100xf32>
    %c0_1 = arith.constant 0 : index
    %c0_2 = arith.constant 0 : index
    %6 = vector.load %arg1[%c0_1, %c0_2] : memref<100x64xf32, #tpu.memory_space<vmem>>, vector<100x64xf32>
    %cst = arith.constant dense<0.000000e+00> : vector<16x64xf32>
    %7 = tpu.matmul %5, %6, %cst {dimension_numbers = #tpu.dot_dimension_numbers<[1], [0], [0], [1], [0, 0, 1, 1], [], []>} : vector<16x100xf32>, vector<100x64xf32>, vector<16x64xf32> -> vector<16x64xf32>
    %cst_3 = arith.constant 8.000000e+00 : f32
    %8 = vector.broadcast %cst_3 : f32 to vector<16x64xf32>
    %9 = arith.mulf %7, %8 : vector<16x64xf32>
    %c0_4 = arith.constant 0 : index
    %c0_5 = arith.constant 0 : index
    %10 = vector.load %arg2[%c0_4, %c0_5] : memref<16x64xf32, #tpu.memory_space<vmem>>, vector<16x64xf32>
    %11 = arith.addf %9, %10 : vector<16x64xf32>
    %c0_6 = arith.constant 0 : index
    %c0_7 = arith.constant 0 : index
    %12 = vector.load %arg3[%c0_6, %c0_7] : memref<8x8xf32, #tpu.memory_space<vmem>>, vector<8x8xf32>
    %13 = arith.truncf %11 : vector<16x64xf32> to vector<16x64xbf16>
    %c0_8 = arith.constant 0 : index
    %c0_9 = arith.constant 0 : index
    %c0_10 = arith.constant 0 : index
    %14 = vector.load %arg4[%c0_8, %c0_9, %c0_10] : memref<2x64x192xbf16, #tpu.memory_space<vmem>>, vector<1x64x192xbf16>
    %15 = vector.shape_cast %14 : vector<1x64x192xbf16> to vector<64x192xbf16>
    %cst_11 = arith.constant dense<0.000000e+00> : vector<16x192xf32>
    %16 = tpu.matmul %13, %15, %cst_11 {dimension_numbers = #tpu.dot_dimension_numbers<[1], [0], [0], [1], [0, 0, 1, 1], [], []>} : vector<16x64xbf16>, vector<64x192xbf16>, vector<16x192xf32> -> vector<16x192xf32>
    %c0_12 = arith.constant 0 : index
    %c0_13 = arith.constant 0 : index
    %c0_14 = arith.constant 0 : index
    %17 = vector.load %arg5[%c0_12, %c0_13, %c0_14] : memref<2x1x192xf32, #tpu.memory_space<vmem>>, vector<1x1x192xf32>
    %18 = vector.shape_cast %17 : vector<1x1x192xf32> to vector<1x192xf32>
    %19 = vector.broadcast %18 : vector<1x192xf32> to vector<16x192xf32>
    %20 = arith.addf %16, %19 : vector<16x192xf32>
    %21 = vector.extract_strided_slice %20 {offsets = [0, 0], sizes = [16, 64], strides = [1, 1]} : vector<16x192xf32> to vector<16x64xf32>
    %22 = vector.extract_strided_slice %20 {offsets = [0, 64], sizes = [16, 64], strides = [1, 1]} : vector<16x192xf32> to vector<16x64xf32>
    %23 = vector.extract_strided_slice %20 {offsets = [0, 128], sizes = [16, 64], strides = [1, 1]} : vector<16x192xf32> to vector<16x64xf32>
    %24 = vector.extract_strided_slice %21 {offsets = [0, 0], sizes = [8, 32], strides = [1, 1]} : vector<16x64xf32> to vector<8x32xf32>
    %25 = arith.truncf %24 : vector<8x32xf32> to vector<8x32xbf16>
    %26 = vector.extract_strided_slice %22 {offsets = [0, 0], sizes = [8, 32], strides = [1, 1]} : vector<16x64xf32> to vector<8x32xf32>
    %27 = arith.truncf %26 : vector<8x32xf32> to vector<8x32xbf16>
    %28 = vector.extract_strided_slice %23 {offsets = [0, 0], sizes = [8, 32], strides = [1, 1]} : vector<16x64xf32> to vector<8x32xf32>
    %29 = arith.truncf %28 : vector<8x32xf32> to vector<8x32xbf16>
    %30 = tpu.transpose %27, [1, 0] : vector<8x32xbf16> -> vector<32x8xbf16>
    %cst_15 = arith.constant dense<0.000000e+00> : vector<8x8xf32>
    %31 = tpu.matmul %25, %30, %cst_15 {dimension_numbers = #tpu.dot_dimension_numbers<[1], [0], [0], [1], [0, 0, 1, 1], [], []>} : vector<8x32xbf16>, vector<32x8xbf16>, vector<8x8xf32> -> vector<8x8xf32>
    %cst_16 = arith.constant 0.176776692 : f32
    %32 = vector.broadcast %cst_16 : f32 to vector<8x8xf32>
    %33 = arith.mulf %31, %32 : vector<8x8xf32>
    %34 = arith.addf %33, %12 : vector<8x8xf32>
    %cst_17 = arith.constant dense<0xFF800000> : vector<8xf32>
    %35 = vector.multi_reduction <maximumf>, %34, %cst_17 [1] : vector<8x8xf32> to vector<8xf32>
    %36 = vector.shape_cast %35 : vector<8xf32> to vector<8x1xf32>
    %37 = vector.broadcast %36 : vector<8x1xf32> to vector<8x8xf32>
    %38 = arith.subf %34, %37 : vector<8x8xf32>
    %39 = math.exp %38 : vector<8x8xf32>
    %cst_18 = arith.constant dense<0.000000e+00> : vector<8xf32>
    %40 = vector.multi_reduction <add>, %39, %cst_18 [1] : vector<8x8xf32> to vector<8xf32>
    %41 = vector.shape_cast %40 : vector<8xf32> to vector<8x1xf32>
    %42 = tpu.reciprocal %41 {approx = true} : vector<8x1xf32> -> vector<8x1xf32>
    %43 = vector.broadcast %42 : vector<8x1xf32> to vector<8x8xf32>
    %44 = arith.mulf %39, %43 : vector<8x8xf32>
    %45 = arith.truncf %44 : vector<8x8xf32> to vector<8x8xbf16>
    %cst_19 = arith.constant dense<0.000000e+00> : vector<8x32xf32>
    %46 = tpu.matmul %45, %29, %cst_19 {dimension_numbers = #tpu.dot_dimension_numbers<[1], [0], [0], [1], [0, 0, 1, 1], [], []>} : vector<8x8xbf16>, vector<8x32xbf16>, vector<8x32xf32> -> vector<8x32xf32>
    %c0_20 = arith.constant 0 : index
    %c0_21 = arith.constant 0 : index
    %47 = vector.load %arg19[%c0_20, %c0_21] : memref<16x64xf32, #tpu.memory_space<vmem>>, vector<8x32xf32>
    tpu.vector_store %arg19[%c0_20, %c0_21], %46 {strides = array<i32>} : memref<16x64xf32, #tpu.memory_space<vmem>>, vector<8x32xf32>,
    %48 = vector.extract_strided_slice %21 {offsets = [0, 32], sizes = [8, 32], strides = [1, 1]} : vector<16x64xf32> to vector<8x32xf32>
    %49 = arith.truncf %48 : vector<8x32xf32> to vector<8x32xbf16>
    %50 = vector.extract_strided_slice %22 {offsets = [0, 32], sizes = [8, 32], strides = [1, 1]} : vector<16x64xf32> to vector<8x32xf32>
    %51 = arith.truncf %50 : vector<8x32xf32> to vector<8x32xbf16>
    %52 = vector.extract_strided_slice %23 {offsets = [0, 32], sizes = [8, 32], strides = [1, 1]} : vector<16x64xf32> to vector<8x32xf32>
    %53 = arith.truncf %52 : vector<8x32xf32> to vector<8x32xbf16>
    %54 = tpu.transpose %51, [1, 0] : vector<8x32xbf16> -> vector<32x8xbf16>
    %cst_22 = arith.constant dense<0.000000e+00> : vector<8x8xf32>
    %55 = tpu.matmul %49, %54, %cst_22 {dimension_numbers = #tpu.dot_dimension_numbers<[1], [0], [0], [1], [0, 0, 1, 1], [], []>} : vector<8x32xbf16>, vector<32x8xbf16>, vector<8x8xf32> -> vector<8x8xf32>
    %cst_23 = arith.constant 0.176776692 : f32
    %56 = vector.broadcast %cst_23 : f32 to vector<8x8xf32>
    %57 = arith.mulf %55, %56 : vector<8x8xf32>
    %58 = arith.addf %57, %12 : vector<8x8xf32>
    %cst_24 = arith.constant dense<0xFF800000> : vector<8xf32>
    %59 = vector.multi_reduction <maximumf>, %58, %cst_24 [1] : vector<8x8xf32> to vector<8xf32>
    %60 = vector.shape_cast %59 : vector<8xf32> to vector<8x1xf32>
    %61 = vector.broadcast %60 : vector<8x1xf32> to vector<8x8xf32>
    %62 = arith.subf %58, %61 : vector<8x8xf32>
    %63 = math.exp %62 : vector<8x8xf32>
    %cst_25 = arith.constant dense<0.000000e+00> : vector<8xf32>
    %64 = vector.multi_reduction <add>, %63, %cst_25 [1] : vector<8x8xf32> to vector<8xf32>
    %65 = vector.shape_cast %64 : vector<8xf32> to vector<8x1xf32>
    %66 = tpu.reciprocal %65 {approx = true} : vector<8x1xf32> -> vector<8x1xf32>
    %67 = vector.broadcast %66 : vector<8x1xf32> to vector<8x8xf32>
    %68 = arith.mulf %63, %67 : vector<8x8xf32>
    %69 = arith.truncf %68 : vector<8x8xf32> to vector<8x8xbf16>
    %cst_26 = arith.constant dense<0.000000e+00> : vector<8x32xf32>
    %70 = tpu.matmul %69, %53, %cst_26 {dimension_numbers = #tpu.dot_dimension_numbers<[1], [0], [0], [1], [0, 0, 1, 1], [], []>} : vector<8x8xbf16>, vector<8x32xbf16>, vector<8x32xf32> -> vector<8x32xf32>
    %c0_27 = arith.constant 0 : index
    %c32 = arith.constant 32 : index
    %71 = vector.load %arg19[%c0_27, %c32] : memref<16x64xf32, #tpu.memory_space<vmem>>, vector<8x32xf32>
    tpu.vector_store %arg19[%c0_27, %c32], %70 {strides = array<i32>} : memref<16x64xf32, #tpu.memory_space<vmem>>, vector<8x32xf32>,
    %72 = vector.extract_strided_slice %21 {offsets = [8, 0], sizes = [8, 32], strides = [1, 1]} : vector<16x64xf32> to vector<8x32xf32>
    %73 = arith.truncf %72 : vector<8x32xf32> to vector<8x32xbf16>
    %74 = vector.extract_strided_slice %22 {offsets = [8, 0], sizes = [8, 32], strides = [1, 1]} : vector<16x64xf32> to vector<8x32xf32>
    %75 = arith.truncf %74 : vector<8x32xf32> to vector<8x32xbf16>
    %76 = vector.extract_strided_slice %23 {offsets = [8, 0], sizes = [8, 32], strides = [1, 1]} : vector<16x64xf32> to vector<8x32xf32>
    %77 = arith.truncf %76 : vector<8x32xf32> to vector<8x32xbf16>
    %78 = tpu.transpose %75, [1, 0] : vector<8x32xbf16> -> vector<32x8xbf16>
    %cst_28 = arith.constant dense<0.000000e+00> : vector<8x8xf32>
    %79 = tpu.matmul %73, %78, %cst_28 {dimension_numbers = #tpu.dot_dimension_numbers<[1], [0], [0], [1], [0, 0, 1, 1], [], []>} : vector<8x32xbf16>, vector<32x8xbf16>, vector<8x8xf32> -> vector<8x8xf32>
    %cst_29 = arith.constant 0.176776692 : f32
    %80 = vector.broadcast %cst_29 : f32 to vector<8x8xf32>
    %81 = arith.mulf %79, %80 : vector<8x8xf32>
    %82 = arith.addf %81, %12 : vector<8x8xf32>
    %cst_30 = arith.constant dense<0xFF800000> : vector<8xf32>
    %83 = vector.multi_reduction <maximumf>, %82, %cst_30 [1] : vector<8x8xf32> to vector<8xf32>
    %84 = vector.shape_cast %83 : vector<8xf32> to vector<8x1xf32>
    %85 = vector.broadcast %84 : vector<8x1xf32> to vector<8x8xf32>
    %86 = arith.subf %82, %85 : vector<8x8xf32>
    %87 = math.exp %86 : vector<8x8xf32>
    %cst_31 = arith.constant dense<0.000000e+00> : vector<8xf32>
    %88 = vector.multi_reduction <add>, %87, %cst_31 [1] : vector<8x8xf32> to vector<8xf32>
    %89 = vector.shape_cast %88 : vector<8xf32> to vector<8x1xf32>
    %90 = tpu.reciprocal %89 {approx = true} : vector<8x1xf32> -> vector<8x1xf32>
    %91 = vector.broadcast %90 : vector<8x1xf32> to vector<8x8xf32>
    %92 = arith.mulf %87, %91 : vector<8x8xf32>
    %93 = arith.truncf %92 : vector<8x8xf32> to vector<8x8xbf16>
    %cst_32 = arith.constant dense<0.000000e+00> : vector<8x32xf32>
    %94 = tpu.matmul %93, %77, %cst_32 {dimension_numbers = #tpu.dot_dimension_numbers<[1], [0], [0], [1], [0, 0, 1, 1], [], []>} : vector<8x8xbf16>, vector<8x32xbf16>, vector<8x32xf32> -> vector<8x32xf32>
    %c8 = arith.constant 8 : index
    %c0_33 = arith.constant 0 : index
    %95 = vector.load %arg19[%c8, %c0_33] : memref<16x64xf32, #tpu.memory_space<vmem>>, vector<8x32xf32>
    tpu.vector_store %arg19[%c8, %c0_33], %94 {strides = array<i32>} : memref<16x64xf32, #tpu.memory_space<vmem>>, vector<8x32xf32>,
    %96 = vector.extract_strided_slice %21 {offsets = [8, 32], sizes = [8, 32], strides = [1, 1]} : vector<16x64xf32> to vector<8x32xf32>
    %97 = arith.truncf %96 : vector<8x32xf32> to vector<8x32xbf16>
    %98 = vector.extract_strided_slice %22 {offsets = [8, 32], sizes = [8, 32], strides = [1, 1]} : vector<16x64xf32> to vector<8x32xf32>
    %99 = arith.truncf %98 : vector<8x32xf32> to vector<8x32xbf16>
    %100 = vector.extract_strided_slice %23 {offsets = [8, 32], sizes = [8, 32], strides = [1, 1]} : vector<16x64xf32> to vector<8x32xf32>
    %101 = arith.truncf %100 : vector<8x32xf32> to vector<8x32xbf16>
    %102 = tpu.transpose %99, [1, 0] : vector<8x32xbf16> -> vector<32x8xbf16>
    %cst_34 = arith.constant dense<0.000000e+00> : vector<8x8xf32>
    %103 = tpu.matmul %97, %102, %cst_34 {dimension_numbers = #tpu.dot_dimension_numbers<[1], [0], [0], [1], [0, 0, 1, 1], [], []>} : vector<8x32xbf16>, vector<32x8xbf16>, vector<8x8xf32> -> vector<8x8xf32>
    %cst_35 = arith.constant 0.176776692 : f32
    %104 = vector.broadcast %cst_35 : f32 to vector<8x8xf32>
    %105 = arith.mulf %103, %104 : vector<8x8xf32>
    %106 = arith.addf %105, %12 : vector<8x8xf32>
    %cst_36 = arith.constant dense<0xFF800000> : vector<8xf32>
    %107 = vector.multi_reduction <maximumf>, %106, %cst_36 [1] : vector<8x8xf32> to vector<8xf32>
    %108 = vector.shape_cast %107 : vector<8xf32> to vector<8x1xf32>
    %109 = vector.broadcast %108 : vector<8x1xf32> to vector<8x8xf32>
    %110 = arith.subf %106, %109 : vector<8x8xf32>
    %111 = math.exp %110 : vector<8x8xf32>
    %cst_37 = arith.constant dense<0.000000e+00> : vector<8xf32>
    %112 = vector.multi_reduction <add>, %111, %cst_37 [1] : vector<8x8xf32> to vector<8xf32>
    %113 = vector.shape_cast %112 : vector<8xf32> to vector<8x1xf32>
    %114 = tpu.reciprocal %113 {approx = true} : vector<8x1xf32> -> vector<8x1xf32>
    %115 = vector.broadcast %114 : vector<8x1xf32> to vector<8x8xf32>
    %116 = arith.mulf %111, %115 : vector<8x8xf32>
    %117 = arith.truncf %116 : vector<8x8xf32> to vector<8x8xbf16>
    %cst_38 = arith.constant dense<0.000000e+00> : vector<8x32xf32>
    %118 = tpu.matmul %117, %101, %cst_38 {dimension_numbers = #tpu.dot_dimension_numbers<[1], [0], [0], [1], [0, 0, 1, 1], [], []>} : vector<8x8xbf16>, vector<8x32xbf16>, vector<8x32xf32> -> vector<8x32xf32>
    %c8_39 = arith.constant 8 : index
    %c32_40 = arith.constant 32 : index
    %119 = vector.load %arg19[%c8_39, %c32_40] : memref<16x64xf32, #tpu.memory_space<vmem>>, vector<8x32xf32>
    tpu.vector_store %arg19[%c8_39, %c32_40], %118 {strides = array<i32>} : memref<16x64xf32, #tpu.memory_space<vmem>>, vector<8x32xf32>,
    %c0_41 = arith.constant 0 : index
    %c0_42 = arith.constant 0 : index
    %120 = vector.load %arg19[%c0_41, %c0_42] : memref<16x64xf32, #tpu.memory_space<vmem>>, vector<16x64xf32>
    %121 = arith.truncf %120 : vector<16x64xf32> to vector<16x64xbf16>
    %c0_43 = arith.constant 0 : index
    %c0_44 = arith.constant 0 : index
    %c0_45 = arith.constant 0 : index
    %122 = vector.load %arg6[%c0_43, %c0_44, %c0_45] : memref<2x64x64xbf16, #tpu.memory_space<vmem>>, vector<1x64x64xbf16>
    %123 = vector.shape_cast %122 : vector<1x64x64xbf16> to vector<64x64xbf16>
    %cst_46 = arith.constant dense<0.000000e+00> : vector<16x64xf32>
    %124 = tpu.matmul %121, %123, %cst_46 {dimension_numbers = #tpu.dot_dimension_numbers<[1], [0], [0], [1], [0, 0, 1, 1], [], []>} : vector<16x64xbf16>, vector<64x64xbf16>, vector<16x64xf32> -> vector<16x64xf32>
    %c0_47 = arith.constant 0 : index
    %c0_48 = arith.constant 0 : index
    %c0_49 = arith.constant 0 : index
    %125 = vector.load %arg7[%c0_47, %c0_48, %c0_49] : memref<2x1x64xf32, #tpu.memory_space<vmem>>, vector<1x1x64xf32>
    %126 = vector.shape_cast %125 : vector<1x1x64xf32> to vector<1x64xf32>
    %127 = vector.broadcast %126 : vector<1x64xf32> to vector<16x64xf32>
    %128 = arith.addf %124, %127 : vector<16x64xf32>
    %129 = arith.addf %11, %128 : vector<16x64xf32>
    %cst_50 = arith.constant dense<0.000000e+00> : vector<16xf32>
    %130 = vector.multi_reduction <add>, %129, %cst_50 [1] : vector<16x64xf32> to vector<16xf32>
    %131 = vector.shape_cast %130 : vector<16xf32> to vector<16x1xf32>
    %cst_51 = arith.constant 6.400000e+01 : f32
    %132 = vector.broadcast %cst_51 : f32 to vector<16x1xf32>
    %133 = arith.divf %131, %132 : vector<16x1xf32>
    %134 = vector.broadcast %133 : vector<16x1xf32> to vector<16x64xf32>
    %135 = arith.subf %129, %134 : vector<16x64xf32>
    %136 = arith.mulf %135, %135 : vector<16x64xf32>
    %cst_52 = arith.constant dense<0.000000e+00> : vector<16xf32>
    %137 = vector.multi_reduction <add>, %136, %cst_52 [1] : vector<16x64xf32> to vector<16xf32>
    %138 = vector.shape_cast %137 : vector<16xf32> to vector<16x1xf32>
    %cst_53 = arith.constant 6.400000e+01 : f32
    %139 = vector.broadcast %cst_53 : f32 to vector<16x1xf32>
    %140 = arith.divf %138, %139 : vector<16x1xf32>
    %141 = vector.broadcast %133 : vector<16x1xf32> to vector<16x64xf32>
    %142 = arith.subf %129, %141 : vector<16x64xf32>
    %cst_54 = arith.constant 9.99999974E-6 : f32
    %143 = vector.broadcast %cst_54 : f32 to vector<16x1xf32>
    %144 = arith.addf %140, %143 : vector<16x1xf32>
    %145 = math.rsqrt %144 : vector<16x1xf32>
    %146 = vector.broadcast %145 : vector<16x1xf32> to vector<16x64xf32>
    %147 = arith.mulf %142, %146 : vector<16x64xf32>
    %c0_55 = arith.constant 0 : index
    %c0_56 = arith.constant 0 : index
    %c0_57 = arith.constant 0 : index
    %148 = vector.load %arg8[%c0_55, %c0_56, %c0_57] : memref<2x1x64xf32, #tpu.memory_space<vmem>>, vector<1x1x64xf32>
    %149 = vector.shape_cast %148 : vector<1x1x64xf32> to vector<1x64xf32>
    %150 = vector.broadcast %149 : vector<1x64xf32> to vector<16x64xf32>
    %151 = arith.mulf %147, %150 : vector<16x64xf32>
    %c0_58 = arith.constant 0 : index
    %c0_59 = arith.constant 0 : index
    %c0_60 = arith.constant 0 : index
    %152 = vector.load %arg9[%c0_58, %c0_59, %c0_60] : memref<2x1x64xf32, #tpu.memory_space<vmem>>, vector<1x1x64xf32>
    %153 = vector.shape_cast %152 : vector<1x1x64xf32> to vector<1x64xf32>
    %154 = vector.broadcast %153 : vector<1x64xf32> to vector<16x64xf32>
    %155 = arith.addf %151, %154 : vector<16x64xf32>
    %156 = arith.truncf %155 : vector<16x64xf32> to vector<16x64xbf16>
    %c0_61 = arith.constant 0 : index
    %c0_62 = arith.constant 0 : index
    %c0_63 = arith.constant 0 : index
    %157 = vector.load %arg10[%c0_61, %c0_62, %c0_63] : memref<2x64x256xbf16, #tpu.memory_space<vmem>>, vector<1x64x256xbf16>
    %158 = vector.shape_cast %157 : vector<1x64x256xbf16> to vector<64x256xbf16>
    %cst_64 = arith.constant dense<0.000000e+00> : vector<16x256xf32>
    %159 = tpu.matmul %156, %158, %cst_64 {dimension_numbers = #tpu.dot_dimension_numbers<[1], [0], [0], [1], [0, 0, 1, 1], [], []>} : vector<16x64xbf16>, vector<64x256xbf16>, vector<16x256xf32> -> vector<16x256xf32>
    %c0_65 = arith.constant 0 : index
    %c0_66 = arith.constant 0 : index
    %c0_67 = arith.constant 0 : index
    %160 = vector.load %arg11[%c0_65, %c0_66, %c0_67] : memref<2x1x256xf32, #tpu.memory_space<vmem>>, vector<1x1x256xf32>
    %161 = vector.shape_cast %160 : vector<1x1x256xf32> to vector<1x256xf32>
    %162 = vector.broadcast %161 : vector<1x256xf32> to vector<16x256xf32>
    %163 = arith.addf %159, %162 : vector<16x256xf32>
    %cst_68 = arith.constant 0.000000e+00 : f32
    %164 = vector.broadcast %cst_68 : f32 to vector<16x256xf32>
    %165 = arith.maximumf %163, %164 : vector<16x256xf32>
    %166 = arith.truncf %165 : vector<16x256xf32> to vector<16x256xbf16>
    %c0_69 = arith.constant 0 : index
    %c0_70 = arith.constant 0 : index
    %c0_71 = arith.constant 0 : index
    %167 = vector.load %arg12[%c0_69, %c0_70, %c0_71] : memref<2x256x64xbf16, #tpu.memory_space<vmem>>, vector<1x256x64xbf16>
    %168 = vector.shape_cast %167 : vector<1x256x64xbf16> to vector<256x64xbf16>
    %cst_72 = arith.constant dense<0.000000e+00> : vector<16x64xf32>
    %169 = tpu.matmul %166, %168, %cst_72 {dimension_numbers = #tpu.dot_dimension_numbers<[1], [0], [0], [1], [0, 0, 1, 1], [], []>} : vector<16x256xbf16>, vector<256x64xbf16>, vector<16x64xf32> -> vector<16x64xf32>
    %c0_73 = arith.constant 0 : index
    %c0_74 = arith.constant 0 : index
    %c0_75 = arith.constant 0 : index
    %170 = vector.load %arg13[%c0_73, %c0_74, %c0_75] : memref<2x1x64xf32, #tpu.memory_space<vmem>>, vector<1x1x64xf32>
    %171 = vector.shape_cast %170 : vector<1x1x64xf32> to vector<1x64xf32>
    %172 = vector.broadcast %171 : vector<1x64xf32> to vector<16x64xf32>
    %173 = arith.addf %169, %172 : vector<16x64xf32>
    %174 = arith.addf %155, %173 : vector<16x64xf32>
    %cst_76 = arith.constant dense<0.000000e+00> : vector<16xf32>
    %175 = vector.multi_reduction <add>, %174, %cst_76 [1] : vector<16x64xf32> to vector<16xf32>
    %176 = vector.shape_cast %175 : vector<16xf32> to vector<16x1xf32>
    %cst_77 = arith.constant 6.400000e+01 : f32
    %177 = vector.broadcast %cst_77 : f32 to vector<16x1xf32>
    %178 = arith.divf %176, %177 : vector<16x1xf32>
    %179 = vector.broadcast %178 : vector<16x1xf32> to vector<16x64xf32>
    %180 = arith.subf %174, %179 : vector<16x64xf32>
    %181 = arith.mulf %180, %180 : vector<16x64xf32>
    %cst_78 = arith.constant dense<0.000000e+00> : vector<16xf32>
    %182 = vector.multi_reduction <add>, %181, %cst_78 [1] : vector<16x64xf32> to vector<16xf32>
    %183 = vector.shape_cast %182 : vector<16xf32> to vector<16x1xf32>
    %cst_79 = arith.constant 6.400000e+01 : f32
    %184 = vector.broadcast %cst_79 : f32 to vector<16x1xf32>
    %185 = arith.divf %183, %184 : vector<16x1xf32>
    %186 = vector.broadcast %178 : vector<16x1xf32> to vector<16x64xf32>
    %187 = arith.subf %174, %186 : vector<16x64xf32>
    %cst_80 = arith.constant 9.99999974E-6 : f32
    %188 = vector.broadcast %cst_80 : f32 to vector<16x1xf32>
    %189 = arith.addf %185, %188 : vector<16x1xf32>
    %190 = math.rsqrt %189 : vector<16x1xf32>
    %191 = vector.broadcast %190 : vector<16x1xf32> to vector<16x64xf32>
    %192 = arith.mulf %187, %191 : vector<16x64xf32>
    %c0_81 = arith.constant 0 : index
    %c0_82 = arith.constant 0 : index
    %c0_83 = arith.constant 0 : index
    %193 = vector.load %arg14[%c0_81, %c0_82, %c0_83] : memref<2x1x64xf32, #tpu.memory_space<vmem>>, vector<1x1x64xf32>
    %194 = vector.shape_cast %193 : vector<1x1x64xf32> to vector<1x64xf32>
    %195 = vector.broadcast %194 : vector<1x64xf32> to vector<16x64xf32>
    %196 = arith.mulf %192, %195 : vector<16x64xf32>
    %c0_84 = arith.constant 0 : index
    %c0_85 = arith.constant 0 : index
    %c0_86 = arith.constant 0 : index
    %197 = vector.load %arg15[%c0_84, %c0_85, %c0_86] : memref<2x1x64xf32, #tpu.memory_space<vmem>>, vector<1x1x64xf32>
    %198 = vector.shape_cast %197 : vector<1x1x64xf32> to vector<1x64xf32>
    %199 = vector.broadcast %198 : vector<1x64xf32> to vector<16x64xf32>
    %200 = arith.addf %196, %199 : vector<16x64xf32>
    %201 = arith.truncf %200 : vector<16x64xf32> to vector<16x64xbf16>
    %c1 = arith.constant 1 : index
    %c0_87 = arith.constant 0 : index
    %c0_88 = arith.constant 0 : index
    %202 = vector.load %arg4[%c1, %c0_87, %c0_88] : memref<2x64x192xbf16, #tpu.memory_space<vmem>>, vector<1x64x192xbf16>
    %203 = vector.shape_cast %202 : vector<1x64x192xbf16> to vector<64x192xbf16>
    %cst_89 = arith.constant dense<0.000000e+00> : vector<16x192xf32>
    %204 = tpu.matmul %201, %203, %cst_89 {dimension_numbers = #tpu.dot_dimension_numbers<[1], [0], [0], [1], [0, 0, 1, 1], [], []>} : vector<16x64xbf16>, vector<64x192xbf16>, vector<16x192xf32> -> vector<16x192xf32>
    %c1_90 = arith.constant 1 : index
    %c0_91 = arith.constant 0 : index
    %c0_92 = arith.constant 0 : index
    %205 = vector.load %arg5[%c1_90, %c0_91, %c0_92] : memref<2x1x192xf32, #tpu.memory_space<vmem>>, vector<1x1x192xf32>
    %206 = vector.shape_cast %205 : vector<1x1x192xf32> to vector<1x192xf32>
    %207 = vector.broadcast %206 : vector<1x192xf32> to vector<16x192xf32>
    %208 = arith.addf %204, %207 : vector<16x192xf32>
    %209 = vector.extract_strided_slice %208 {offsets = [0, 0], sizes = [16, 64], strides = [1, 1]} : vector<16x192xf32> to vector<16x64xf32>
    %210 = vector.extract_strided_slice %208 {offsets = [0, 64], sizes = [16, 64], strides = [1, 1]} : vector<16x192xf32> to vector<16x64xf32>
    %211 = vector.extract_strided_slice %208 {offsets = [0, 128], sizes = [16, 64], strides = [1, 1]} : vector<16x192xf32> to vector<16x64xf32>
    %212 = vector.extract_strided_slice %209 {offsets = [0, 0], sizes = [8, 32], strides = [1, 1]} : vector<16x64xf32> to vector<8x32xf32>
    %213 = arith.truncf %212 : vector<8x32xf32> to vector<8x32xbf16>
    %214 = vector.extract_strided_slice %210 {offsets = [0, 0], sizes = [8, 32], strides = [1, 1]} : vector<16x64xf32> to vector<8x32xf32>
    %215 = arith.truncf %214 : vector<8x32xf32> to vector<8x32xbf16>
    %216 = vector.extract_strided_slice %211 {offsets = [0, 0], sizes = [8, 32], strides = [1, 1]} : vector<16x64xf32> to vector<8x32xf32>
    %217 = arith.truncf %216 : vector<8x32xf32> to vector<8x32xbf16>
    %218 = tpu.transpose %215, [1, 0] : vector<8x32xbf16> -> vector<32x8xbf16>
    %cst_93 = arith.constant dense<0.000000e+00> : vector<8x8xf32>
    %219 = tpu.matmul %213, %218, %cst_93 {dimension_numbers = #tpu.dot_dimension_numbers<[1], [0], [0], [1], [0, 0, 1, 1], [], []>} : vector<8x32xbf16>, vector<32x8xbf16>, vector<8x8xf32> -> vector<8x8xf32>
    %cst_94 = arith.constant 0.176776692 : f32
    %220 = vector.broadcast %cst_94 : f32 to vector<8x8xf32>
    %221 = arith.mulf %219, %220 : vector<8x8xf32>
    %222 = arith.addf %221, %12 : vector<8x8xf32>
    %cst_95 = arith.constant dense<0xFF800000> : vector<8xf32>
    %223 = vector.multi_reduction <maximumf>, %222, %cst_95 [1] : vector<8x8xf32> to vector<8xf32>
    %224 = vector.shape_cast %223 : vector<8xf32> to vector<8x1xf32>
    %225 = vector.broadcast %224 : vector<8x1xf32> to vector<8x8xf32>
    %226 = arith.subf %222, %225 : vector<8x8xf32>
    %227 = math.exp %226 : vector<8x8xf32>
    %cst_96 = arith.constant dense<0.000000e+00> : vector<8xf32>
    %228 = vector.multi_reduction <add>, %227, %cst_96 [1] : vector<8x8xf32> to vector<8xf32>
    %229 = vector.shape_cast %228 : vector<8xf32> to vector<8x1xf32>
    %230 = tpu.reciprocal %229 {approx = true} : vector<8x1xf32> -> vector<8x1xf32>
    %231 = vector.broadcast %230 : vector<8x1xf32> to vector<8x8xf32>
    %232 = arith.mulf %227, %231 : vector<8x8xf32>
    %233 = arith.truncf %232 : vector<8x8xf32> to vector<8x8xbf16>
    %cst_97 = arith.constant dense<0.000000e+00> : vector<8x32xf32>
    %234 = tpu.matmul %233, %217, %cst_97 {dimension_numbers = #tpu.dot_dimension_numbers<[1], [0], [0], [1], [0, 0, 1, 1], [], []>} : vector<8x8xbf16>, vector<8x32xbf16>, vector<8x32xf32> -> vector<8x32xf32>
    %c0_98 = arith.constant 0 : index
    %c0_99 = arith.constant 0 : index
    %235 = vector.load %arg19[%c0_98, %c0_99] : memref<16x64xf32, #tpu.memory_space<vmem>>, vector<8x32xf32>
    tpu.vector_store %arg19[%c0_98, %c0_99], %234 {strides = array<i32>} : memref<16x64xf32, #tpu.memory_space<vmem>>, vector<8x32xf32>,
    %236 = vector.extract_strided_slice %209 {offsets = [0, 32], sizes = [8, 32], strides = [1, 1]} : vector<16x64xf32> to vector<8x32xf32>
    %237 = arith.truncf %236 : vector<8x32xf32> to vector<8x32xbf16>
    %238 = vector.extract_strided_slice %210 {offsets = [0, 32], sizes = [8, 32], strides = [1, 1]} : vector<16x64xf32> to vector<8x32xf32>
    %239 = arith.truncf %238 : vector<8x32xf32> to vector<8x32xbf16>
    %240 = vector.extract_strided_slice %211 {offsets = [0, 32], sizes = [8, 32], strides = [1, 1]} : vector<16x64xf32> to vector<8x32xf32>
    %241 = arith.truncf %240 : vector<8x32xf32> to vector<8x32xbf16>
    %242 = tpu.transpose %239, [1, 0] : vector<8x32xbf16> -> vector<32x8xbf16>
    %cst_100 = arith.constant dense<0.000000e+00> : vector<8x8xf32>
    %243 = tpu.matmul %237, %242, %cst_100 {dimension_numbers = #tpu.dot_dimension_numbers<[1], [0], [0], [1], [0, 0, 1, 1], [], []>} : vector<8x32xbf16>, vector<32x8xbf16>, vector<8x8xf32> -> vector<8x8xf32>
    %cst_101 = arith.constant 0.176776692 : f32
    %244 = vector.broadcast %cst_101 : f32 to vector<8x8xf32>
    %245 = arith.mulf %243, %244 : vector<8x8xf32>
    %246 = arith.addf %245, %12 : vector<8x8xf32>
    %cst_102 = arith.constant dense<0xFF800000> : vector<8xf32>
    %247 = vector.multi_reduction <maximumf>, %246, %cst_102 [1] : vector<8x8xf32> to vector<8xf32>
    %248 = vector.shape_cast %247 : vector<8xf32> to vector<8x1xf32>
    %249 = vector.broadcast %248 : vector<8x1xf32> to vector<8x8xf32>
    %250 = arith.subf %246, %249 : vector<8x8xf32>
    %251 = math.exp %250 : vector<8x8xf32>
    %cst_103 = arith.constant dense<0.000000e+00> : vector<8xf32>
    %252 = vector.multi_reduction <add>, %251, %cst_103 [1] : vector<8x8xf32> to vector<8xf32>
    %253 = vector.shape_cast %252 : vector<8xf32> to vector<8x1xf32>
    %254 = tpu.reciprocal %253 {approx = true} : vector<8x1xf32> -> vector<8x1xf32>
    %255 = vector.broadcast %254 : vector<8x1xf32> to vector<8x8xf32>
    %256 = arith.mulf %251, %255 : vector<8x8xf32>
    %257 = arith.truncf %256 : vector<8x8xf32> to vector<8x8xbf16>
    %cst_104 = arith.constant dense<0.000000e+00> : vector<8x32xf32>
    %258 = tpu.matmul %257, %241, %cst_104 {dimension_numbers = #tpu.dot_dimension_numbers<[1], [0], [0], [1], [0, 0, 1, 1], [], []>} : vector<8x8xbf16>, vector<8x32xbf16>, vector<8x32xf32> -> vector<8x32xf32>
    %c0_105 = arith.constant 0 : index
    %c32_106 = arith.constant 32 : index
    %259 = vector.load %arg19[%c0_105, %c32_106] : memref<16x64xf32, #tpu.memory_space<vmem>>, vector<8x32xf32>
    tpu.vector_store %arg19[%c0_105, %c32_106], %258 {strides = array<i32>} : memref<16x64xf32, #tpu.memory_space<vmem>>, vector<8x32xf32>,
    %260 = vector.extract_strided_slice %209 {offsets = [8, 0], sizes = [8, 32], strides = [1, 1]} : vector<16x64xf32> to vector<8x32xf32>
    %261 = arith.truncf %260 : vector<8x32xf32> to vector<8x32xbf16>
    %262 = vector.extract_strided_slice %210 {offsets = [8, 0], sizes = [8, 32], strides = [1, 1]} : vector<16x64xf32> to vector<8x32xf32>
    %263 = arith.truncf %262 : vector<8x32xf32> to vector<8x32xbf16>
    %264 = vector.extract_strided_slice %211 {offsets = [8, 0], sizes = [8, 32], strides = [1, 1]} : vector<16x64xf32> to vector<8x32xf32>
    %265 = arith.truncf %264 : vector<8x32xf32> to vector<8x32xbf16>
    %266 = tpu.transpose %263, [1, 0] : vector<8x32xbf16> -> vector<32x8xbf16>
    %cst_107 = arith.constant dense<0.000000e+00> : vector<8x8xf32>
    %267 = tpu.matmul %261, %266, %cst_107 {dimension_numbers = #tpu.dot_dimension_numbers<[1], [0], [0], [1], [0, 0, 1, 1], [], []>} : vector<8x32xbf16>, vector<32x8xbf16>, vector<8x8xf32> -> vector<8x8xf32>
    %cst_108 = arith.constant 0.176776692 : f32
    %268 = vector.broadcast %cst_108 : f32 to vector<8x8xf32>
    %269 = arith.mulf %267, %268 : vector<8x8xf32>
    %270 = arith.addf %269, %12 : vector<8x8xf32>
    %cst_109 = arith.constant dense<0xFF800000> : vector<8xf32>
    %271 = vector.multi_reduction <maximumf>, %270, %cst_109 [1] : vector<8x8xf32> to vector<8xf32>
    %272 = vector.shape_cast %271 : vector<8xf32> to vector<8x1xf32>
    %273 = vector.broadcast %272 : vector<8x1xf32> to vector<8x8xf32>
    %274 = arith.subf %270, %273 : vector<8x8xf32>
    %275 = math.exp %274 : vector<8x8xf32>
    %cst_110 = arith.constant dense<0.000000e+00> : vector<8xf32>
    %276 = vector.multi_reduction <add>, %275, %cst_110 [1] : vector<8x8xf32> to vector<8xf32>
    %277 = vector.shape_cast %276 : vector<8xf32> to vector<8x1xf32>
    %278 = tpu.reciprocal %277 {approx = true} : vector<8x1xf32> -> vector<8x1xf32>
    %279 = vector.broadcast %278 : vector<8x1xf32> to vector<8x8xf32>
    %280 = arith.mulf %275, %279 : vector<8x8xf32>
    %281 = arith.truncf %280 : vector<8x8xf32> to vector<8x8xbf16>
    %cst_111 = arith.constant dense<0.000000e+00> : vector<8x32xf32>
    %282 = tpu.matmul %281, %265, %cst_111 {dimension_numbers = #tpu.dot_dimension_numbers<[1], [0], [0], [1], [0, 0, 1, 1], [], []>} : vector<8x8xbf16>, vector<8x32xbf16>, vector<8x32xf32> -> vector<8x32xf32>
    %c8_112 = arith.constant 8 : index
    %c0_113 = arith.constant 0 : index
    %283 = vector.load %arg19[%c8_112, %c0_113] : memref<16x64xf32, #tpu.memory_space<vmem>>, vector<8x32xf32>
    tpu.vector_store %arg19[%c8_112, %c0_113], %282 {strides = array<i32>} : memref<16x64xf32, #tpu.memory_space<vmem>>, vector<8x32xf32>,
    %284 = vector.extract_strided_slice %209 {offsets = [8, 32], sizes = [8, 32], strides = [1, 1]} : vector<16x64xf32> to vector<8x32xf32>
    %285 = arith.truncf %284 : vector<8x32xf32> to vector<8x32xbf16>
    %286 = vector.extract_strided_slice %210 {offsets = [8, 32], sizes = [8, 32], strides = [1, 1]} : vector<16x64xf32> to vector<8x32xf32>
    %287 = arith.truncf %286 : vector<8x32xf32> to vector<8x32xbf16>
    %288 = vector.extract_strided_slice %211 {offsets = [8, 32], sizes = [8, 32], strides = [1, 1]} : vector<16x64xf32> to vector<8x32xf32>
    %289 = arith.truncf %288 : vector<8x32xf32> to vector<8x32xbf16>
    %290 = tpu.transpose %287, [1, 0] : vector<8x32xbf16> -> vector<32x8xbf16>
    %cst_114 = arith.constant dense<0.000000e+00> : vector<8x8xf32>
    %291 = tpu.matmul %285, %290, %cst_114 {dimension_numbers = #tpu.dot_dimension_numbers<[1], [0], [0], [1], [0, 0, 1, 1], [], []>} : vector<8x32xbf16>, vector<32x8xbf16>, vector<8x8xf32> -> vector<8x8xf32>
    %cst_115 = arith.constant 0.176776692 : f32
    %292 = vector.broadcast %cst_115 : f32 to vector<8x8xf32>
    %293 = arith.mulf %291, %292 : vector<8x8xf32>
    %294 = arith.addf %293, %12 : vector<8x8xf32>
    %cst_116 = arith.constant dense<0xFF800000> : vector<8xf32>
    %295 = vector.multi_reduction <maximumf>, %294, %cst_116 [1] : vector<8x8xf32> to vector<8xf32>
    %296 = vector.shape_cast %295 : vector<8xf32> to vector<8x1xf32>
    %297 = vector.broadcast %296 : vector<8x1xf32> to vector<8x8xf32>
    %298 = arith.subf %294, %297 : vector<8x8xf32>
    %299 = math.exp %298 : vector<8x8xf32>
    %cst_117 = arith.constant dense<0.000000e+00> : vector<8xf32>
    %300 = vector.multi_reduction <add>, %299, %cst_117 [1] : vector<8x8xf32> to vector<8xf32>
    %301 = vector.shape_cast %300 : vector<8xf32> to vector<8x1xf32>
    %302 = tpu.reciprocal %301 {approx = true} : vector<8x1xf32> -> vector<8x1xf32>
    %303 = vector.broadcast %302 : vector<8x1xf32> to vector<8x8xf32>
    %304 = arith.mulf %299, %303 : vector<8x8xf32>
    %305 = arith.truncf %304 : vector<8x8xf32> to vector<8x8xbf16>
    %cst_118 = arith.constant dense<0.000000e+00> : vector<8x32xf32>
    %306 = tpu.matmul %305, %289, %cst_118 {dimension_numbers = #tpu.dot_dimension_numbers<[1], [0], [0], [1], [0, 0, 1, 1], [], []>} : vector<8x8xbf16>, vector<8x32xbf16>, vector<8x32xf32> -> vector<8x32xf32>
    %c8_119 = arith.constant 8 : index
    %c32_120 = arith.constant 32 : index
    %307 = vector.load %arg19[%c8_119, %c32_120] : memref<16x64xf32, #tpu.memory_space<vmem>>, vector<8x32xf32>
    tpu.vector_store %arg19[%c8_119, %c32_120], %306 {strides = array<i32>} : memref<16x64xf32, #tpu.memory_space<vmem>>, vector<8x32xf32>,
    %c0_121 = arith.constant 0 : index
    %c0_122 = arith.constant 0 : index
    %308 = vector.load %arg19[%c0_121, %c0_122] : memref<16x64xf32, #tpu.memory_space<vmem>>, vector<16x64xf32>
    %309 = arith.truncf %308 : vector<16x64xf32> to vector<16x64xbf16>
    %c1_123 = arith.constant 1 : index
    %c0_124 = arith.constant 0 : index
    %c0_125 = arith.constant 0 : index
    %310 = vector.load %arg6[%c1_123, %c0_124, %c0_125] : memref<2x64x64xbf16, #tpu.memory_space<vmem>>, vector<1x64x64xbf16>
    %311 = vector.shape_cast %310 : vector<1x64x64xbf16> to vector<64x64xbf16>
    %cst_126 = arith.constant dense<0.000000e+00> : vector<16x64xf32>
    %312 = tpu.matmul %309, %311, %cst_126 {dimension_numbers = #tpu.dot_dimension_numbers<[1], [0], [0], [1], [0, 0, 1, 1], [], []>} : vector<16x64xbf16>, vector<64x64xbf16>, vector<16x64xf32> -> vector<16x64xf32>
    %c1_127 = arith.constant 1 : index
    %c0_128 = arith.constant 0 : index
    %c0_129 = arith.constant 0 : index
    %313 = vector.load %arg7[%c1_127, %c0_128, %c0_129] : memref<2x1x64xf32, #tpu.memory_space<vmem>>, vector<1x1x64xf32>
    %314 = vector.shape_cast %313 : vector<1x1x64xf32> to vector<1x64xf32>
    %315 = vector.broadcast %314 : vector<1x64xf32> to vector<16x64xf32>
    %316 = arith.addf %312, %315 : vector<16x64xf32>
    %317 = arith.addf %200, %316 : vector<16x64xf32>
    %cst_130 = arith.constant dense<0.000000e+00> : vector<16xf32>
    %318 = vector.multi_reduction <add>, %317, %cst_130 [1] : vector<16x64xf32> to vector<16xf32>
    %319 = vector.shape_cast %318 : vector<16xf32> to vector<16x1xf32>
    %cst_131 = arith.constant 6.400000e+01 : f32
    %320 = vector.broadcast %cst_131 : f32 to vector<16x1xf32>
    %321 = arith.divf %319, %320 : vector<16x1xf32>
    %322 = vector.broadcast %321 : vector<16x1xf32> to vector<16x64xf32>
    %323 = arith.subf %317, %322 : vector<16x64xf32>
    %324 = arith.mulf %323, %323 : vector<16x64xf32>
    %cst_132 = arith.constant dense<0.000000e+00> : vector<16xf32>
    %325 = vector.multi_reduction <add>, %324, %cst_132 [1] : vector<16x64xf32> to vector<16xf32>
    %326 = vector.shape_cast %325 : vector<16xf32> to vector<16x1xf32>
    %cst_133 = arith.constant 6.400000e+01 : f32
    %327 = vector.broadcast %cst_133 : f32 to vector<16x1xf32>
    %328 = arith.divf %326, %327 : vector<16x1xf32>
    %329 = vector.broadcast %321 : vector<16x1xf32> to vector<16x64xf32>
    %330 = arith.subf %317, %329 : vector<16x64xf32>
    %cst_134 = arith.constant 9.99999974E-6 : f32
    %331 = vector.broadcast %cst_134 : f32 to vector<16x1xf32>
    %332 = arith.addf %328, %331 : vector<16x1xf32>
    %333 = math.rsqrt %332 : vector<16x1xf32>
    %334 = vector.broadcast %333 : vector<16x1xf32> to vector<16x64xf32>
    %335 = arith.mulf %330, %334 : vector<16x64xf32>
    %c1_135 = arith.constant 1 : index
    %c0_136 = arith.constant 0 : index
    %c0_137 = arith.constant 0 : index
    %336 = vector.load %arg8[%c1_135, %c0_136, %c0_137] : memref<2x1x64xf32, #tpu.memory_space<vmem>>, vector<1x1x64xf32>
    %337 = vector.shape_cast %336 : vector<1x1x64xf32> to vector<1x64xf32>
    %338 = vector.broadcast %337 : vector<1x64xf32> to vector<16x64xf32>
    %339 = arith.mulf %335, %338 : vector<16x64xf32>
    %c1_138 = arith.constant 1 : index
    %c0_139 = arith.constant 0 : index
    %c0_140 = arith.constant 0 : index
    %340 = vector.load %arg9[%c1_138, %c0_139, %c0_140] : memref<2x1x64xf32, #tpu.memory_space<vmem>>, vector<1x1x64xf32>
    %341 = vector.shape_cast %340 : vector<1x1x64xf32> to vector<1x64xf32>
    %342 = vector.broadcast %341 : vector<1x64xf32> to vector<16x64xf32>
    %343 = arith.addf %339, %342 : vector<16x64xf32>
    %344 = arith.truncf %343 : vector<16x64xf32> to vector<16x64xbf16>
    %c1_141 = arith.constant 1 : index
    %c0_142 = arith.constant 0 : index
    %c0_143 = arith.constant 0 : index
    %345 = vector.load %arg10[%c1_141, %c0_142, %c0_143] : memref<2x64x256xbf16, #tpu.memory_space<vmem>>, vector<1x64x256xbf16>
    %346 = vector.shape_cast %345 : vector<1x64x256xbf16> to vector<64x256xbf16>
    %cst_144 = arith.constant dense<0.000000e+00> : vector<16x256xf32>
    %347 = tpu.matmul %344, %346, %cst_144 {dimension_numbers = #tpu.dot_dimension_numbers<[1], [0], [0], [1], [0, 0, 1, 1], [], []>} : vector<16x64xbf16>, vector<64x256xbf16>, vector<16x256xf32> -> vector<16x256xf32>
    %c1_145 = arith.constant 1 : index
    %c0_146 = arith.constant 0 : index
    %c0_147 = arith.constant 0 : index
    %348 = vector.load %arg11[%c1_145, %c0_146, %c0_147] : memref<2x1x256xf32, #tpu.memory_space<vmem>>, vector<1x1x256xf32>
    %349 = vector.shape_cast %348 : vector<1x1x256xf32> to vector<1x256xf32>
    %350 = vector.broadcast %349 : vector<1x256xf32> to vector<16x256xf32>
    %351 = arith.addf %347, %350 : vector<16x256xf32>
    %cst_148 = arith.constant 0.000000e+00 : f32
    %352 = vector.broadcast %cst_148 : f32 to vector<16x256xf32>
    %353 = arith.maximumf %351, %352 : vector<16x256xf32>
    %354 = arith.truncf %353 : vector<16x256xf32> to vector<16x256xbf16>
    %c1_149 = arith.constant 1 : index
    %c0_150 = arith.constant 0 : index
    %c0_151 = arith.constant 0 : index
    %355 = vector.load %arg12[%c1_149, %c0_150, %c0_151] : memref<2x256x64xbf16, #tpu.memory_space<vmem>>, vector<1x256x64xbf16>
    %356 = vector.shape_cast %355 : vector<1x256x64xbf16> to vector<256x64xbf16>
    %cst_152 = arith.constant dense<0.000000e+00> : vector<16x64xf32>
    %357 = tpu.matmul %354, %356, %cst_152 {dimension_numbers = #tpu.dot_dimension_numbers<[1], [0], [0], [1], [0, 0, 1, 1], [], []>} : vector<16x256xbf16>, vector<256x64xbf16>, vector<16x64xf32> -> vector<16x64xf32>
    %c1_153 = arith.constant 1 : index
    %c0_154 = arith.constant 0 : index
    %c0_155 = arith.constant 0 : index
    %358 = vector.load %arg13[%c1_153, %c0_154, %c0_155] : memref<2x1x64xf32, #tpu.memory_space<vmem>>, vector<1x1x64xf32>
    %359 = vector.shape_cast %358 : vector<1x1x64xf32> to vector<1x64xf32>
    %360 = vector.broadcast %359 : vector<1x64xf32> to vector<16x64xf32>
    %361 = arith.addf %357, %360 : vector<16x64xf32>
    %362 = arith.addf %343, %361 : vector<16x64xf32>
    %cst_156 = arith.constant dense<0.000000e+00> : vector<16xf32>
    %363 = vector.multi_reduction <add>, %362, %cst_156 [1] : vector<16x64xf32> to vector<16xf32>
    %364 = vector.shape_cast %363 : vector<16xf32> to vector<16x1xf32>
    %cst_157 = arith.constant 6.400000e+01 : f32
    %365 = vector.broadcast %cst_157 : f32 to vector<16x1xf32>
    %366 = arith.divf %364, %365 : vector<16x1xf32>
    %367 = vector.broadcast %366 : vector<16x1xf32> to vector<16x64xf32>
    %368 = arith.subf %362, %367 : vector<16x64xf32>
    %369 = arith.mulf %368, %368 : vector<16x64xf32>
    %cst_158 = arith.constant dense<0.000000e+00> : vector<16xf32>
    %370 = vector.multi_reduction <add>, %369, %cst_158 [1] : vector<16x64xf32> to vector<16xf32>
    %371 = vector.shape_cast %370 : vector<16xf32> to vector<16x1xf32>
    %cst_159 = arith.constant 6.400000e+01 : f32
    %372 = vector.broadcast %cst_159 : f32 to vector<16x1xf32>
    %373 = arith.divf %371, %372 : vector<16x1xf32>
    %374 = vector.broadcast %366 : vector<16x1xf32> to vector<16x64xf32>
    %375 = arith.subf %362, %374 : vector<16x64xf32>
    %cst_160 = arith.constant 9.99999974E-6 : f32
    %376 = vector.broadcast %cst_160 : f32 to vector<16x1xf32>
    %377 = arith.addf %373, %376 : vector<16x1xf32>
    %378 = math.rsqrt %377 : vector<16x1xf32>
    %379 = vector.broadcast %378 : vector<16x1xf32> to vector<16x64xf32>
    %380 = arith.mulf %375, %379 : vector<16x64xf32>
    %c1_161 = arith.constant 1 : index
    %c0_162 = arith.constant 0 : index
    %c0_163 = arith.constant 0 : index
    %381 = vector.load %arg14[%c1_161, %c0_162, %c0_163] : memref<2x1x64xf32, #tpu.memory_space<vmem>>, vector<1x1x64xf32>
    %382 = vector.shape_cast %381 : vector<1x1x64xf32> to vector<1x64xf32>
    %383 = vector.broadcast %382 : vector<1x64xf32> to vector<16x64xf32>
    %384 = arith.mulf %380, %383 : vector<16x64xf32>
    %c1_164 = arith.constant 1 : index
    %c0_165 = arith.constant 0 : index
    %c0_166 = arith.constant 0 : index
    %385 = vector.load %arg15[%c1_164, %c0_165, %c0_166] : memref<2x1x64xf32, #tpu.memory_space<vmem>>, vector<1x1x64xf32>
    %386 = vector.shape_cast %385 : vector<1x1x64xf32> to vector<1x64xf32>
    %387 = vector.broadcast %386 : vector<1x64xf32> to vector<16x64xf32>
    %388 = arith.addf %384, %387 : vector<16x64xf32>
    %c0_167 = arith.constant 0 : index
    %c0_168 = arith.constant 0 : index
    %389 = vector.load %arg16[%c0_167, %c0_168] : memref<1x64xf32, #tpu.memory_space<vmem>>, vector<1x64xf32>
    %390 = vector.broadcast %389 : vector<1x64xf32> to vector<16x64xf32>
    %391 = arith.mulf %388, %390 : vector<16x64xf32>
    %cst_169 = arith.constant dense<0.000000e+00> : vector<16xf32>
    %392 = vector.multi_reduction <add>, %391, %cst_169 [1] : vector<16x64xf32> to vector<16xf32>
    %393 = vector.shape_cast %392 : vector<16xf32> to vector<16x1xf32>
    %c0_170 = arith.constant 0 : index
    %c0_171 = arith.constant 0 : index
    %394 = vector.load %arg17[%c0_170, %c0_171] : memref<1x1xf32, #tpu.memory_space<vmem>>, vector<1x1xf32>
    %395 = vector.broadcast %394 : vector<1x1xf32> to vector<16x1xf32>
    %396 = arith.addf %393, %395 : vector<16x1xf32>
    %c0_172 = arith.constant 0 : index
    %c0_173 = arith.constant 0 : index
    %397 = vector.load %arg18[%c0_172, %c0_173] : memref<16x1xf32, #tpu.memory_space<vmem>>, vector<16x1xf32>
    tpu.vector_store %arg18[%c0_172, %c0_173], %396 {strides = array<i32>} : memref<16x1xf32, #tpu.memory_space<vmem>>, vector<16x1xf32>,
    return
  }
}

</mosaic_0001>

<bundles_post_ra>
// kernel: transformer_forward.1
= control target key start
LH: loop header
LB: loop body
LE: loop exit
PB: predicated region body
PF: predicated region fallthrough
CT: control target
= control target key end

     0   :  { %vm98_vm0 = vcmask 1043456   ;;  %v2870_v0 = vmov 0   ;;  %v2871_v20 = vmov 0.0   ;;  %v64_v21 = vlaneseq  ;;  %s2875_s26 = smov 32   ;;  %s3527_s0 = inlined_call_operand.vmem [shape: s32[16,1], index: 0, kind: input, shape index: {}]   ;;  %s3528_s1 = inlined_call_operand.vmem [shape: f32[100,64], index: 1, kind: input, shape index: {}]   ;;  %s3529_s4 = inlined_call_operand.vmem [shape: bf16[2,64,192], index: 4, kind: input, shape index: {}]   ;;  %s3530_s2 = inlined_call_operand.vmem [shape: f32[16,64], index: 2, kind: input, shape index: {}]   ;;  %s3531_s5 = inlined_call_operand.vmem [shape: f32[2,1,192], index: 5, kind: input, shape index: {}]   ;;  %s3532_s3 = inlined_call_operand.vmem [shape: f32[8,8], index: 3, kind: input, shape index: {}]   ;;  %s3533_s6 = inlined_call_operand.vmem [shape: bf16[2,64,64], index: 6, kind: input, shape index: {}]   ;;  %s3534_s7 = inlined_call_operand.vmem [shape: f32[2,1,64], index: 7, kind: input, shape index: {}]   ;;  %s3535_s10 = inlined_call_operand.vmem [shape: bf16[2,64,256], index: 10, kind: input, shape index: {}]   ;;  %s3536_s12 = inlined_call_operand.vmem [shape: bf16[2,256,64], index: 12, kind: input, shape index: {}]   ;;  %s3537_s8 = inlined_call_operand.vmem [shape: f32[2,1,64], index: 8, kind: input, shape index: {}]   ;;  %s3538_s9 = inlined_call_operand.vmem [shape: f32[2,1,64], index: 9, kind: input, shape index: {}]   ;;  %s3539_s11 = inlined_call_operand.vmem [shape: f32[2,1,256], index: 11, kind: input, shape index: {}]   ;;  %s3540_s13 = inlined_call_operand.vmem [shape: f32[2,1,64], index: 13, kind: input, shape index: {}]   ;;  %s3541_s14 = inlined_call_operand.vmem [shape: f32[2,1,64], index: 14, kind: input, shape index: {}]   ;;  %s3542_s15 = inlined_call_operand.vmem [shape: f32[2,1,64], index: 15, kind: input, shape index: {}]   ;;  %s3543_s17 = inlined_call_operand.<no memory space> [shape: f32[1,1], index: 17, kind: input, shape index: {}]   ;;  %s3544_s16 = inlined_call_operand.vmem [shape: f32[1,64], index: 16, kind: input, shape index: {}]   ;;  %s3545_s18 = inlined_call_operand.vmem [shape: f32[16,1], index: 18, kind: output, shape index: {}]  }
   0x1   :  { %3549 = sst [smem:[#allocation4_spill]] %s3527_s0  ;;  %2733 = vset.pattern.permute.xlu0 %v2870_v0  ;;  %281 = vmatprep.mubr.bf16.mxu1 %v2870_v0  ;;  %vm91_vm1 = vcmask 818176   ;;  %v180_v33 = vld [vmem:[%s3530_s2 + $0x8] sm:$0xff]  ;;  %v179_v35 = vld [vmem:[%s3530_s2] sm:$0xff]  ;;  %vm245_vm4 = vcmask 523264   ;;  %vm2872_vm5 = vmmov 0  }
   0x2   :  { %3550 = sst [smem:[#allocation5_spill]] %s3528_s1  ;;  %v65_v22 = vand.u32 127, %v64_v21  ;;  %v196_v40 = vshrl.u32 %v64_v21, 7  ;;  %v193_v42 = vld [vmem:[%s3531_s5] sm:$0x3]  ;;  %s2873_s2 = smov 96  }
   0x3   :  { %3551 = sst [smem:[#allocation6_spill]] %s3529_s4  ;;  %vm297_vm6 = vcmask 261120   ;;  %vm346_vm7 = vcmask 64512   ;;  %vm523_vm8 = vcmask 523520   ;;  %vm2293_vm9 = vcmask 7168  }
   0x4   :  { %s3552_s29 = sld [smem:[#allocation4_spill]]  ;;  %v3061_v41 = vsub.s32 0, %v196_v40  ;;  %v3066_v43 = vsub.s32 1, %v196_v40 }
   0x5   :  { %s3553_s19 = sld [smem:[#allocation5_spill]] }
   0x6   :  { %s3554_s30 = sld [smem:[#allocation6_spill]]  ;;  %v198_v44 = vrot.slane %v193_v42, %v3061_v41  ;;  %v3074_v45 = vrot.slane %v193_v42, %v3066_v43 }
   0xa   :  { %v62_v1 = vld [vmem:[%s3552_s29] sm:$0xff]  ;;  %v63_v4 = vld [vmem:[%s3552_s29 + $0x8] sm:$0xff] }
   0xb   :  { %v90_v2 = vld [vmem:[%s3553_s19 + $0x60] sm:$0xf]  ;;  %67 = vperm.xlu0 %2733, %v62_v1   ;;  %v89_v3 = vld [vmem:[%s3553_s19 + $0x58] sm:$0xff]  ;;  %v88_v5 = vld [vmem:[%s3553_s19 + $0x50] sm:$0xff] }
   0xc   :  { %2578 = vmatprep.subr.msk.mxu0 %vm98_vm0, %v90_v2  ;;  %v87_v6 = vld [vmem:[%s3553_s19 + $0x48] sm:$0xff]  ;;  %v86_v7 = vld [vmem:[%s3553_s19 + $0x40] sm:$0xff]  ;;  %v2734_v8 = vld [vmem:[%s3554_s30 + $0x34] ss:$8 sps:$4 sm:$0xff]  }
   0xd   :  { %2579 = vmatpush3.msk.msra.mxu0 %vm98_vm0, %v90_v2  ;;  %v85_v9 = vld [vmem:[%s3553_s19 + $0x38] sm:$0xff]  ;;  %257 = vmatprep.subr.bf16.mxu1 %v2734_v8  ;;  %v2737_v11 = vld [vmem:[%s3554_s30 + $0x24] ss:$8 sps:$4 sm:$0xff]   ;;  %v2739_v12 = vld [vmem:[%s3554_s30 + $0x20] ss:$8 sps:$4 sm:$0xff]  }
   0xe   :  { %2580 = vmatprep.subr.mxu0 %v89_v3  ;;  %v2736_v10 = vld [vmem:[%s3554_s30 + $0x30] ss:$8 sps:$4 sm:$0xff]   ;;  %v83_v14 = vld [vmem:[%s3553_s19 + $0x28] sm:$0xff]  ;;  %v82_v15 = vld [vmem:[%s3553_s19 + $0x20] sm:$0xff] }
   0xf   :  { %2581 = vmatpush3.msra.mxu0 %v89_v3  ;;  %70 = vperm.xlu0 %2733, %v63_v4   ;;  %v84_v13 = vld [vmem:[%s3553_s19 + $0x30] sm:$0xff]  ;;  %v81_v16 = vld [vmem:[%s3553_s19 + $0x18] sm:$0xff]  ;;  %v79_v18 = vld [vmem:[%s3553_s19 + $0x8] sm:$0xff] }
  0x10   :  { %2582 = vmatprep.subr.mxu0 %v88_v5  ;;  %258 = vmatpush1.bf16.msra.mxu1 %v2736_v10  ;;  %v80_v17 = vld [vmem:[%s3553_s19 + $0x10] sm:$0xff]  ;;  %v78_v19 = vld [vmem:[%s3553_s19] sm:$0xff]  ;;  %s2874_s19 = smov 64  }
  0x11   :  { %2583 = vmatpush3.msra.mxu0 %v88_v5  ;;  %259 = vmatprep.subr.bf16.mxu1 %v2737_v11  ;;  %v2740_v27 = vld [vmem:[%s3554_s30 + $0x14] ss:$8 sps:$4 sm:$0xff]   ;;  %v2742_v28 = vld [vmem:[%s3554_s30 + $0x10] ss:$8 sps:$4 sm:$0xff]   ;;  %v2743_v29 = vld [vmem:[%s3554_s30 + $0x4] ss:$8 sps:$4 sm:$0xff]  }
  0x12   :  { %2584 = vmatprep.subr.mxu0 %v87_v6  ;;  %v2745_v30 = vld [vmem:[%s3554_s30] ss:$8 sps:$4 sm:$0xff]  }
  0x13   :  { %2585 = vmatpush3.msra.mxu0 %v87_v6  ;;  %v3110_v5 = vld [vmem:[%s3532_s3] sm:$0xff] }
  0x14   :  { %2586 = vmatprep.subr.mxu0 %v86_v7  ;;  %260 = vmatpush1.bf16.msra.mxu1 %v2739_v12 }
  0x15   :  { %2587 = vmatpush3.msra.mxu0 %v86_v7  ;;  %261 = vmatprep.subr.bf16.mxu1 %v2740_v27 }
  0x16   :  { %2588 = vmatprep.subr.mxu0 %v85_v9 }
  0x17   :  { %2589 = vmatpush3.msra.mxu0 %v85_v9 }
  0x18   :  { %2590 = vmatprep.subr.mxu0 %v84_v13  ;;  %262 = vmatpush1.bf16.msra.mxu1 %v2742_v28 }
  0x19   :  { %2591 = vmatpush3.msra.mxu0 %v84_v13  ;;  %263 = vmatprep.subr.bf16.mxu1 %v2743_v29 }
  0x1a   :  { %2592 = vmatprep.subr.mxu0 %v83_v14 }
  0x1b   :  { %2593 = vmatpush3.msra.mxu0 %v83_v14 }
  0x1c   :  { %2594 = vmatprep.subr.mxu0 %v82_v15  ;;  %264 = vmatpush1.bf16.msra.mxu1 %v2745_v30 }
  0x1d   :  { %2595 = vmatpush3.msra.mxu0 %v82_v15  ;;  %2607 = vmatprep.subr.bf16.mxu1 %v2871_v20 }
  0x1e   :  { %2596 = vmatprep.subr.mxu0 %v81_v16 }
  0x1f   :  { %2597 = vmatpush3.msra.mxu0 %v81_v16 }
  0x20   :  { %2598 = vmatprep.subr.mxu0 %v80_v17 }
  0x21   :  { %2599 = vmatpush3.msra.mxu0 %v80_v17 }
  0x22   :  { %2600 = vmatprep.subr.mxu0 %v79_v18 }
  0x23   :  { %2601 = vmatpush3.msra.mxu0 %v79_v18 }
  0x24   :  { %2602 = vmatprep.subr.mxu0 %v78_v19 }
  0x25   :  { %2603 = vmatpush3.msra.mxu0 %v78_v19 }
  0x26   :  { %2613 = vmatprep.subr.bf16.mxu0 %v2871_v20 }
  0x86   :  { %v68_v23 = vpop.permute.xlu0 %67 }
  0x87   :  { %vm72_vm2 = vcmp.eq.s32.totalorder %v65_v22, %v68_v23 }
  0x88   :  { %v2300_v24 = vsel %vm72_vm2, 1.0, %v2871_v20 }
  0x89   :  { %2604 = vmatprep.mubr.msk.f32.mxu0 %vm91_vm1, %v2300_v24 }
  0x8a   :  { %v71_v25 = vpop.permute.xlu0 %70 }
  0x8b   :  { %vm73_vm3 = vcmp.eq.s32.totalorder %v65_v22, %v71_v25 }
  0x8c   :  { %v2301_v26 = vsel %vm73_vm3, 1.0, %v2871_v20 }
  0x8d   :  { %2605 = vmatmul.mubr.msk.f32.vlgmr.msra.gmra.mxu0 %vm91_vm1, %v2301_v26 }
  0x8e   :  { %2615 = vmatprep.mubr.msk.bf16.mxu0 %vm2872_vm5, %v2871_v20 }
 0x14d   :  { %v2606_v31 = vpop.f32.mrf.mxu0 }
 0x14e   :  { %v178_v32 = vmul.f32 8.0, %v2606_v31 }
 0x14f   :  { %v168_v34 = vpop.f32.mrf.mxu0 }
 0x150   :  { %v177_v36 = vmul.f32 8.0, %v168_v34  ;;  %v3054_v37 = vadd.f32 %v180_v33, %v178_v32 }
 0x152   :  { %v3056_v38 = vadd.f32 %v179_v35, %v177_v36 }
 0x154   :  { %v184_v39 = vpack.c.bf16 %v3054_v37, %v3056_v38 }
 0x156   :  { %2313 = vmatmul.mubr.msk.bf16.vlgmr.msra.gmra.mxu1 %vm245_vm4, %v184_v39 }
 0x157   :  { %2609 = vmatprep.mubr.msk.bf16.mxu1 %vm2872_vm5, %v2871_v20 }
 0x216   :  { %v283_v46 = vpop.f32.mrf.mxu1 }
 0x217   :  { %v284_v47 = vadd.f32 %v283_v46, %v198_v44 }
 0x218   :  { %v285_v48 = vpop.f32.mrf.mxu1 }
 0x219   :  { %v292_v49 = vpack.c.bf16 %v284_v47, %v284_v47  ;;  %v286_v50 = vadd.f32 %v285_v48, %v3074_v45 }
 0x21a   :  { %v287_v51 = vpop.f32.mrf.mxu1 }
 0x21b   :  { %v3077_v52 = vpack.c.bf16 %v286_v50, %v286_v50  ;;  %v288_v53 = vadd.f32 %v287_v51, %v198_v44  ;;  %406 = vrot.lane.b32.xlu0 %v292_v49, %s2873_s2  ;;  %295 = vrot.lane.b32.xlu1 %v292_v49, %s2874_s19 }
 0x21c   :  { %v3105_v3 = vpop.f32.mrf.mxu1 }
 0x21d   :  { %v363_v54 = vsel %vm98_vm0, %v3077_v52, 0  ;;  %v525_v55 = vpack.c.bf16 %v288_v53, %v288_v53 }
 0x21e   :  { %2614 = vmatpush3.bf16.msra.mxu0 %v363_v54 }
 0x21f   :  { %639 = vrot.lane.b32.xlu0 %v525_v55, %s2875_s26  ;;  %408 = vrot.lane.b32.xlu1 %v292_v49, %s2875_s26 }
 0x220   :  { %2625 = vmatprep.subr.bf16.mxu0 %v2871_v20 }
 0x223   :  { %528 = vrot.lane.b32.xlu1 %v525_v55, %s2874_s19 }
 0x227   :  { %637 = vrot.lane.b32.xlu1 %v525_v55, %s2873_s2 }
 0x28d   :  { %v296_v56 = vpop.permute.xlu1 %295  ;;  %v407_v61 = vpop.permute.xlu0 %406 }
 0x28e   :  { %v302_v57 = vsel %vm297_vm6, %v296_v56, 0 }
 0x28f   :  { %2608 = vmatpush3.bf16.xpose.msra.mxu1 %v302_v57 }
 0x290   :  { %2619 = vmatprep.subr.bf16.mxu1 %v2871_v20 }
 0x291   :  { %v409_v58 = vpop.permute.xlu1 %408  ;;  %v640_v63 = vpop.permute.xlu0 %639 }
 0x292   :  { %v414_v59 = vsel %vm297_vm6, %v409_v58, 0  ;;  %v645_v1 = vsel %vm297_vm6, %v640_v63, 0 }
 0x295   :  { %v529_v60 = vpop.permute.xlu1 %528 }
 0x296   :  { %2610 = vmatmul.mubr.msk.bf16.vlgmr.msra.gmra.mxu1 %vm297_vm6, %v292_v49  ;;  %v534_v62 = vsel %vm297_vm6, %v529_v60, 0  ;;  %v290_v60 = vadd.f32 %v3105_v3, %v3074_v45 }
 0x297   :  { %2620 = vmatpush3.bf16.xpose.msra.mxu1 %v414_v59  ;;  %2621 = vmatprep.mubr.msk.bf16.mxu1 %vm2872_vm5, %v2871_v20 }
 0x298   :  { %2631 = vmatprep.subr.bf16.mxu1 %v2871_v20 }
 0x299   :  { %v638_v2 = vpop.permute.xlu1 %637 }
 0x29e   :  { %2622 = vmatmul.mubr.msk.bf16.vlgmr.msra.gmra.mxu1 %vm297_vm6, %v407_v61  ;;  %v526_v61 = vpack.c.bf16 %v290_v60, %v290_v60 }
 0x29f   :  { %2632 = vmatpush3.bf16.xpose.msra.mxu1 %v534_v62  ;;  %2633 = vmatprep.mubr.msk.bf16.mxu1 %vm2872_vm5, %v2871_v20 }
 0x2a0   :  { %2643 = vmatprep.subr.bf16.mxu1 %v2871_v20 }
 0x2a6   :  { %2634 = vmatmul.mubr.msk.bf16.vlgmr.msra.gmra.mxu1 %vm297_vm6, %v525_v55 }
 0x2a7   :  { %2644 = vmatpush3.bf16.xpose.msra.mxu1 %v645_v1  ;;  %2645 = vmatprep.mubr.msk.bf16.mxu1 %vm2872_vm5, %v2871_v20 }
 0x2ae   :  { %2646 = vmatmul.mubr.msk.bf16.vlgmr.msra.gmra.mxu1 %vm297_vm6, %v638_v2 }
 0x356   :  { %v338_v4 = vpop.f32.mrf.mxu1 }
 0x357   :  { %v344_v6 = vmul.f32 0.17677669, %v338_v4 }
 0x358   :  { %v2611_v7 = vpop.f32.mrf.mxu1 }
 0x359   :  { %v345_v8 = vadd.f32 %v344_v6, %v3110_v5 }
 0x35a   :  { %v341_v9 = vpop.f32.mrf.mxu1 }
 0x35b   :  { %v347_v10 = vsel %vm346_vm7, %v345_v8, -inf }
 0x35c   :  { %348 = vmax.xlane.f32.xlu0 %v347_v10  ;;  %v2612_v11 = vpop.f32.mrf.mxu1  ;;  %v594_v10 = vsel %vm98_vm0, %v526_v61, 0 }
 0x35e   :  { %v450_v12 = vpop.f32.mrf.mxu1 }
 0x35f   :  { %v456_v13 = vmul.f32 0.17677669, %v450_v12 }
 0x360   :  { %v2623_v14 = vpop.f32.mrf.mxu1 }
 0x361   :  { %v457_v15 = vadd.f32 %v456_v13, %v3110_v5 }
 0x362   :  { %v453_v16 = vpop.f32.mrf.mxu1 }
 0x363   :  { %v458_v17 = vsel %vm346_vm7, %v457_v15, -inf }
 0x364   :  { %459 = vmax.xlane.f32.xlu1 %v458_v17  ;;  %v2624_v18 = vpop.f32.mrf.mxu1 }
 0x366   :  { %v570_v19 = vpop.f32.mrf.mxu1 }
 0x367   :  { %v576_v21 = vmul.f32 0.17677669, %v570_v19  ;;  %v2746_v19 = vld [vmem:[%s3533_s6 + $0x18] sm:$0xff]  }
 0x368   :  { %v2635_v22 = vpop.f32.mrf.mxu1 }
 0x369   :  { %v577_v23 = vadd.f32 %v576_v21, %v3110_v5  ;;  %v2747_v21 = vld [vmem:[%s3533_s6 + $0x10] sm:$0xff]  }
 0x36a   :  { %v573_v24 = vpop.f32.mrf.mxu1 }
 0x36b   :  { %v578_v25 = vsel %vm346_vm7, %v577_v23, -inf }
 0x36c   :  { %579 = vmax.xlane.f32.xlu0 %v578_v25  ;;  %v2636_v26 = vpop.f32.mrf.mxu1 }
 0x36e   :  { %v681_v27 = vpop.f32.mrf.mxu1 }
 0x36f   :  { %v687_v28 = vmul.f32 0.17677669, %v681_v27 }
 0x370   :  { %v2647_v29 = vpop.f32.mrf.mxu1 }
 0x371   :  { %v688_v30 = vadd.f32 %v687_v28, %v3110_v5  ;;  %v2748_v29 = vld [vmem:[%s3533_s6 + $0x8] sm:$0xff]  }
 0x372   :  { %v684_v31 = vpop.f32.mrf.mxu1 }
 0x373   :  { %v689_v32 = vsel %vm346_vm7, %v688_v30, -inf  ;;  %v2749_v31 = vld [vmem:[%s3533_s6] sm:$0xff]  }
 0x374   :  { %690 = vmax.xlane.f32.xlu0 %v689_v32  ;;  %v2648_v33 = vpop.f32.mrf.mxu1 }
 0x3e5   :  { %v349_v34 = vpop.xlane.xlu0 %348 }
 0x3e6   :  { %v350_v35 = vsub.f32 %v345_v8, %v349_v34 }
 0x3e8   :  { %v351_v36 = vmul.f32 1.442695, %v350_v35 }
 0x3ea   :  { %2822 = vpow2.f32 %v351_v36 }
 0x3ed   :  { %v460_v39 = vpop.xlane.xlu1 %459 }
 0x3ee   :  { %v461_v40 = vsub.f32 %v457_v15, %v460_v39 }
 0x3f0   :  { %v462_v42 = vmul.f32 1.442695, %v461_v40 }
 0x3f2   :  { %2824 = vpow2.f32 %v462_v42 }
 0x3f5   :  { %v580_v44 = vpop.xlane.xlu0 %579 }
 0x3f6   :  { %v581_v46 = vsub.f32 %v577_v23, %v580_v44 }
 0x3f7   :  { %v2823_v47 = vpop.eup %2822 }
 0x3f8   :  { %v582_v48 = vmul.f32 1.442695, %v581_v46  ;;  %v353_v49 = vsel %vm346_vm7, %v2823_v47, 0.0 }
 0x3f9   :  { %354 = vadd.xlane.f32.xlu1 %v353_v49 }
 0x3fa   :  { %2826 = vpow2.f32 %v582_v48 }
 0x3fd   :  { %v691_v50 = vpop.xlane.xlu0 %690 }
 0x3fe   :  { %v692_v51 = vsub.f32 %v688_v30, %v691_v50  ;;  %v2322_v50 = vld [vmem:[%s3534_s7] ss:$0 sm:$0xff] }
 0x3ff   :  { %v2825_v53 = vpop.eup %2824 }
 0x400   :  { %v693_v54 = vmul.f32 1.442695, %v692_v51  ;;  %v464_v55 = vsel %vm346_vm7, %v2825_v53, 0.0 }
 0x401   :  { %465 = vadd.xlane.f32.xlu0 %v464_v55 }
 0x402   :  { %2828 = vpow2.f32 %v693_v54 }
 0x407   :  { %v2827_v56 = vpop.eup %2826 }
 0x408   :  { %v584_v57 = vsel %vm346_vm7, %v2827_v56, 0.0 }
 0x409   :  { %585 = vadd.xlane.f32.xlu1 %v584_v57 }
 0x40f   :  { %v2829_v58 = vpop.eup %2828 }
 0x410   :  { %v695_v59 = vsel %vm346_vm7, %v2829_v58, 0.0 }
 0x411   :  { %696 = vadd.xlane.f32.xlu0 %v695_v59 }
 0x41a   :  { %471 = vrot.lane.b32.xlu1 %v3077_v52, %s2873_s2 }
 0x427   :  { %702 = vrot.lane.b32.xlu0 %v526_v61, %s2873_s2 }
 0x482   :  { %v355_v62 = vpop.xlane.xlu1 %354 }
 0x483   :  { %2830 = vrcp.f32 %v355_v62 }
 0x48a   :  { %v466_v63 = vpop.xlane.xlu0 %465 }
 0x48b   :  { %2832 = vrcp.f32 %v466_v63 }
 0x490   :  { %v2831_v1 = vpop.eup %2830 }
 0x491   :  { %v357_v2 = vmul.f32 %v2831_v1, %v2823_v47 }
 0x492   :  { %v586_v4 = vpop.xlane.xlu1 %585 }
 0x493   :  { %2834 = vrcp.f32 %v586_v4  ;;  %v358_v6 = vpack.c.bf16 %v357_v2, %v357_v2 }
 0x495   :  { %2616 = vmatmul.mubr.msk.bf16.vlgmr.msra.gmra.mxu0 %vm346_vm7, %v358_v6 }
 0x496   :  { %v472_v7 = vpop.permute.xlu1 %471  ;;  %2627 = vmatprep.mubr.msk.bf16.mxu0 %vm2872_vm5, %v2871_v20 }
 0x497   :  { %v477_v45 = vsel %vm98_vm0, %v472_v7, 0 }
 0x498   :  { %v2833_v52 = vpop.eup %2832  ;;  %2626 = vmatpush3.bf16.msra.mxu0 %v477_v45 }
 0x499   :  { %2637 = vmatprep.subr.bf16.mxu0 %v2871_v20  ;;  %v468_v3 = vmul.f32 %v2833_v52, %v2825_v53 }
 0x49a   :  { %v697_v8 = vpop.xlane.xlu0 %696 }
 0x49b   :  { %2836 = vrcp.f32 %v697_v8  ;;  %v469_v9 = vpack.c.bf16 %v468_v3, %v468_v3  ;;  %v2750_v3 = vld [vmem:[%s3535_s10 + $0x30] ss:$8 sps:$4 sm:$0xff]   ;;  %v2755_v8 = vld [vmem:[%s3535_s10 + $0x24] ss:$8 sps:$4 sm:$0xff]  }
 0x49d   :  { %2628 = vmatmul.mubr.msk.bf16.vlgmr.msra.gmra.mxu0 %vm346_vm7, %v469_v9  ;;  %v2753_v9 = vld [vmem:[%s3535_s10 + $0x20] ss:$8 sps:$4 sm:$0xff]  }
 0x49e   :  { %2638 = vmatpush3.bf16.msra.mxu0 %v594_v10  ;;  %2639 = vmatprep.mubr.msk.bf16.mxu0 %vm2872_vm5, %v2871_v20  ;;  %v703_v13 = vpop.permute.xlu0 %702  ;;  %v2758_v10 = vld [vmem:[%s3535_s10 + $0x14] ss:$8 sps:$4 sm:$0xff]  }
 0x49f   :  { %2649 = vmatprep.subr.bf16.mxu0 %v2871_v20  ;;  %v708_v15 = vsel %vm98_vm0, %v703_v13, 0  ;;  %v2759_v13 = vld [vmem:[%s3535_s10] ss:$8 sps:$4 sm:$0xff]  }
 0x4a0   :  { %v2835_v11 = vpop.eup %2834 }
 0x4a1   :  { %v588_v12 = vmul.f32 %v2835_v11, %v2827_v56  ;;  %v2756_v11 = vld [vmem:[%s3535_s10 + $0x10] ss:$8 sps:$4 sm:$0xff]  }
 0x4a3   :  { %v589_v14 = vpack.c.bf16 %v588_v12, %v588_v12  ;;  %v2761_v12 = vld [vmem:[%s3535_s10 + $0x4] ss:$8 sps:$4 sm:$0xff]  }
 0x4a5   :  { %2640 = vmatmul.mubr.msk.bf16.vlgmr.msra.gmra.mxu0 %vm346_vm7, %v589_v14  ;;  %v2762_v14 = vld [vmem:[%s3536_s12 + $0x78] sm:$0xff]  }
 0x4a6   :  { %2650 = vmatpush3.bf16.msra.mxu0 %v708_v15  ;;  %2651 = vmatprep.mubr.msk.bf16.mxu0 %vm2872_vm5, %v2871_v20  ;;  %v2763_v15 = vld [vmem:[%s3536_s12 + $0x38] sm:$0xff]  }
 0x4a7   :  { %2655 = vmatprep.subr.bf16.mxu0 %v2871_v20  ;;  %2513 = vmatprep.subr.bf16.mxu1 %v2762_v14 }
 0x4a8   :  { %v2837_v16 = vpop.eup %2836  ;;  %2514 = vmatpush3.bf16.msra.mxu1 %v2763_v15 }
 0x4a9   :  { %v699_v17 = vmul.f32 %v2837_v16, %v2829_v58  ;;  %v2764_v16 = vld [vmem:[%s3536_s12 + $0x70] sm:$0xff]  }
 0x4aa   :  { %2515 = vmatprep.subr.bf16.mxu1 %v2764_v16 }
 0x4ab   :  { %v700_v18 = vpack.c.bf16 %v699_v17, %v699_v17  ;;  %v2765_v17 = vld [vmem:[%s3536_s12 + $0x30] sm:$0xff]  }
 0x4ac   :  { %2516 = vmatpush3.bf16.msra.mxu1 %v2765_v17 }
 0x4ad   :  { %2652 = vmatmul.mubr.msk.bf16.vlgmr.msra.gmra.mxu0 %vm346_vm7, %v700_v18  ;;  %v2766_v18 = vld [vmem:[%s3536_s12 + $0x68] sm:$0xff]  }
 0x4ae   :  { %2663 = vmatprep.mubr.msk.bf16.mxu0 %vm2872_vm5, %v2871_v20  ;;  %2656 = vmatpush3.bf16.msra.mxu0 %v2746_v19  ;;  %v2767_v19 = vld [vmem:[%s3536_s12 + $0x28] sm:$0xff]  }
 0x4af   :  { %2657 = vmatprep.subr.bf16.mxu0 %v2871_v20  ;;  %2517 = vmatprep.subr.bf16.mxu1 %v2766_v18 }
 0x4b0   :  { %2518 = vmatpush3.bf16.msra.mxu1 %v2767_v19 }
 0x4b2   :  { %2658 = vmatpush3.bf16.msra.mxu0 %v2747_v21  ;;  %v2768_v21 = vld [vmem:[%s3536_s12 + $0x60] sm:$0xff]  }
 0x4b3   :  { %2659 = vmatprep.subr.bf16.mxu0 %v2871_v20  ;;  %2519 = vmatprep.subr.bf16.mxu1 %v2768_v21 }
 0x4b6   :  { %2660 = vmatpush3.bf16.msra.mxu0 %v2748_v29 }
 0x4b7   :  { %2661 = vmatprep.subr.bf16.mxu0 %v2871_v20 }
 0x4ba   :  { %2662 = vmatpush3.bf16.msra.mxu0 %v2749_v31 }
 0x555   :  { %v399_v22 = vpop.f32.mrf.mxu0 }
 0x556   :  { %405 = vst.msk [vmem:[#allocation2] sm:$0xff] %vm297_vm6, %v399_v22  ;;  %v2769_v22 = vld [vmem:[%s3536_s12 + $0x20] sm:$0xff]  }
 0x557   :  { %v2617_v23 = vpop.f32.mrf.mxu0  ;;  %2520 = vmatpush3.bf16.msra.mxu1 %v2769_v22 }
 0x558   :  { %v2770_v23 = vld [vmem:[%s3536_s12 + $0x58] sm:$0xff]  }
 0x559   :  { %v402_v24 = vpop.f32.mrf.mxu0  ;;  %2521 = vmatprep.subr.bf16.mxu1 %v2770_v23 }
 0x55a   :  { %v2771_v24 = vld [vmem:[%s3536_s12 + $0x18] sm:$0xff]  }
 0x55b   :  { %v2618_v25 = vpop.f32.mrf.mxu0  ;;  %2522 = vmatpush3.bf16.msra.mxu1 %v2771_v24 }
 0x55d   :  { %v513_v26 = vpop.f32.mrf.mxu0 }
 0x55e   :  { %520 = vrot.lane.b32.xlu1 %v513_v26, %s2875_s26 }
 0x55f   :  { %v2629_v27 = vpop.f32.mrf.mxu0 }
 0x561   :  { %v516_v28 = vpop.f32.mrf.mxu0 }
 0x563   :  { %v2630_v30 = vpop.f32.mrf.mxu0 }
 0x565   :  { %v630_v32 = vpop.f32.mrf.mxu0 }
 0x566   :  { %636 = vst.msk [vmem:[#allocation2 + $0x8] sm:$0xff] %vm297_vm6, %v630_v32 }
 0x567   :  { %v2641_v33 = vpop.f32.mrf.mxu0 }
 0x568   :  { %v2328_v33 = vld [vmem:[%s3537_s8] ss:$0 sm:$0xff] }
 0x569   :  { %v633_v34 = vpop.f32.mrf.mxu0 }
 0x56b   :  { %v2642_v35 = vpop.f32.mrf.mxu0 }
 0x56d   :  { %v744_v36 = vpop.f32.mrf.mxu0 }
 0x56e   :  { %751 = vrot.lane.b32.xlu1 %v744_v36, %s2875_s26 }
 0x56f   :  { %v2653_v39 = vpop.f32.mrf.mxu0 }
 0x570   :  { %v2329_v39 = vld [vmem:[%s3538_s9] ss:$0 sm:$0xff] }
 0x571   :  { %v747_v40 = vpop.f32.mrf.mxu0 }
 0x573   :  { %v2654_v42 = vpop.f32.mrf.mxu0 }
 0x5d0   :  { %v521_v44 = vpop.permute.xlu1 %520 }
 0x5d1   :  { %524 = vst.msk [vmem:[#allocation2] sm:$0xff] %vm523_vm8, %v521_v44 }
 0x5d8   :  { %v755_v47 = vld [vmem:[#allocation2] sm:$0xff] }
 0x5e0   :  { %v752_v46 = vpop.permute.xlu1 %751 }
 0x5e1   :  { %754 = vst.msk [vmem:[#allocation2 + $0x8] sm:$0xff] %vm523_vm8, %v752_v46 }
 0x5e8   :  { %v756_v48 = vld [vmem:[#allocation2 + $0x8] sm:$0xff] }
 0x5e9   :  { %v757_v49 = vpack.c.bf16 %v756_v48, %v755_v47  ;;  %v2772_v47 = vld [vmem:[%s3536_s12 + $0x50] sm:$0xff]  }
 0x5ea   :  { %v2773_v48 = vld [vmem:[%s3536_s12 + $0x10] sm:$0xff]   ;;  %2523 = vmatprep.subr.bf16.mxu1 %v2772_v47 }
 0x5eb   :  { %2664 = vmatmul.mubr.msk.bf16.vlgmr.msra.gmra.mxu0 %vm245_vm4, %v757_v49  ;;  %2524 = vmatpush3.bf16.msra.mxu1 %v2773_v48  ;;  %v2774_v49 = vld [vmem:[%s3536_s12 + $0x48] sm:$0xff]  }
 0x5ec   :  { %984 = vmatprep.mubr.bf16.mxu0 %v2870_v0  ;;  %2525 = vmatprep.subr.bf16.mxu1 %v2774_v49 }
 0x6ab   :  { %v834_v51 = vpop.f32.mrf.mxu0 }
 0x6ac   :  { %v835_v53 = vadd.f32 %v2322_v50, %v834_v51  ;;  %v2776_v51 = vld [vmem:[%s3536_s12 + $0x40] sm:$0xff]  }
 0x6ad   :  { %v2665_v54 = vpop.f32.mrf.mxu0 }
 0x6ae   :  { %v841_v55 = vadd.f32 %v835_v53, %v3056_v38  ;;  %v2777_v53 = vld [vmem:[%s3536_s12] sm:$0xff]  }
 0x6af   :  { %v837_v56 = vpop.f32.mrf.mxu0  ;;  %v897_v54 = vld [vmem:[%s3539_s11] sm:$0x3] }
 0x6b0   :  { %v838_v57 = vadd.f32 %v2322_v50, %v837_v56  ;;  %v843_v58 = vsel %vm245_vm4, %v841_v55, 0.0  ;;  %v2775_v50 = vld [vmem:[%s3536_s12 + $0x8] sm:$0xff]   ;;  %v906_v56 = vrot.slane %v897_v54, %v3066_v43 }
 0x6b1   :  { %844 = vadd.xlane.f32.xlu0 %v843_v58  ;;  %v2666_v59 = vpop.f32.mrf.mxu0  ;;  %2526 = vmatpush3.bf16.msra.mxu1 %v2775_v50  ;;  %v2356_v50 = vld [vmem:[%s3541_s14] ss:$0 sm:$0xff] }
 0x6b2   :  { %v842_v60 = vadd.f32 %v838_v57, %v3054_v37  ;;  %v2752_v37 = vld [vmem:[%s3535_s10 + $0x34] ss:$8 sps:$4 sm:$0xff]   ;;  %2527 = vmatprep.subr.bf16.mxu1 %v2776_v51  ;;  %v902_v57 = vrot.slane %v897_v54, %v3061_v41 }
 0x6b3   :  { %960 = vmatprep.subr.bf16.mxu0 %v2752_v37  ;;  %v2339_v37 = vld [vmem:[%s3540_s13] ss:$0 sm:$0xff] }
 0x6b4   :  { %v846_v61 = vsel %vm245_vm4, %v842_v60, 0.0  ;;  %961 = vmatpush1.bf16.msra.mxu0 %v2750_v3 }
 0x6b5   :  { %847 = vadd.xlane.f32.xlu1 %v846_v61  ;;  %962 = vmatprep.subr.bf16.mxu0 %v2755_v8 }
 0x6b6   :  { %2528 = vmatpush3.bf16.msra.mxu1 %v2777_v53 }
 0x6b7   :  { %2679 = vmatprep.subr.bf16.mxu1 %v2871_v20 }
 0x6b8   :  { %963 = vmatpush1.bf16.msra.mxu0 %v2753_v9 }
 0x6b9   :  { %964 = vmatprep.subr.bf16.mxu0 %v2758_v10 }
 0x6bc   :  { %965 = vmatpush1.bf16.msra.mxu0 %v2756_v11 }
 0x6bd   :  { %966 = vmatprep.subr.bf16.mxu0 %v2761_v12 }
 0x6c0   :  { %967 = vmatpush1.bf16.msra.mxu0 %v2759_v13 }
 0x73a   :  { %v845_v62 = vpop.xlane.xlu0 %844 }
 0x73b   :  { %v850_v63 = vmul.f32 0.015625, %v845_v62 }
 0x73d   :  { %v852_v1 = vsub.f32 %v841_v55, %v850_v63 }
 0x73e   :  { %v848_v2 = vpop.xlane.xlu1 %847 }
 0x73f   :  { %v851_v4 = vmul.f32 0.015625, %v848_v2  ;;  %v854_v6 = vmul.f32 %v852_v1, %v852_v1 }
 0x741   :  { %v853_v7 = vsub.f32 %v842_v60, %v851_v4  ;;  %v856_v38 = vsel %vm245_vm4, %v854_v6, 0.0 }
 0x742   :  { %857 = vadd.xlane.f32.xlu0 %v856_v38 }
 0x743   :  { %v855_v45 = vmul.f32 %v853_v7, %v853_v7 }
 0x745   :  { %v859_v52 = vsel %vm245_vm4, %v855_v45, 0.0 }
 0x746   :  { %860 = vadd.xlane.f32.xlu0 %v859_v52 }
 0x7cb   :  { %v858_v25 = vpop.xlane.xlu0 %857 }
 0x7cc   :  { %v862_v26 = vmul.f32 0.015625, %v858_v25 }
 0x7ce   :  { %v864_v27 = vadd.f32 1e-05, %v862_v26 }
 0x7cf   :  { %v861_v28 = vpop.xlane.xlu0 %860 }
 0x7d0   :  { %2838 = vrsqrt.f32 %v864_v27  ;;  %v863_v29 = vmul.f32 0.015625, %v861_v28 }
 0x7d2   :  { %v865_v30 = vadd.f32 1e-05, %v863_v29  ;;  %v2780_v29 = vld [vmem:[%s3554_s30 + $0x74] ss:$8 sps:$4 sm:$0xff]  }
 0x7d3   :  { %1297 = vmatprep.subr.bf16.mxu0 %v2780_v29 }
 0x7d4   :  { %2840 = vrsqrt.f32 %v865_v30  ;;  %v2778_v30 = vld [vmem:[%s3554_s30 + $0x70] ss:$8 sps:$4 sm:$0xff]  }
 0x7dd   :  { %v2839_v31 = vpop.eup %2838 }
 0x7de   :  { %v868_v32 = vmul.f32 %v2839_v31, %v852_v1  ;;  %v2783_v31 = vld [vmem:[%s3554_s30 + $0x64] ss:$8 sps:$4 sm:$0xff]  }
 0x7e0   :  { %v877_v36 = vmul.f32 %v2328_v33, %v868_v32  ;;  %v2781_v32 = vld [vmem:[%s3554_s30 + $0x60] ss:$8 sps:$4 sm:$0xff]  }
 0x7e1   :  { %v2841_v34 = vpop.eup %2840 }
 0x7e2   :  { %v869_v35 = vmul.f32 %v2841_v34, %v853_v7  ;;  %v886_v42 = vadd.f32 %v2329_v39, %v877_v36  ;;  %v2784_v34 = vld [vmem:[%s3554_s30 + $0x50] ss:$8 sps:$4 sm:$0xff]   ;;  %v2787_v36 = vld [vmem:[%s3554_s30 + $0x40] ss:$8 sps:$4 sm:$0xff]  }
 0x7e4   :  { %v878_v40 = vmul.f32 %v2328_v33, %v869_v35  ;;  %v2786_v33 = vld [vmem:[%s3554_s30 + $0x54] ss:$8 sps:$4 sm:$0xff]   ;;  %v2789_v35 = vld [vmem:[%s3554_s30 + $0x44] ss:$8 sps:$4 sm:$0xff]  }
 0x7e6   :  { %v887_v44 = vadd.f32 %v2329_v39, %v878_v40 }
 0x7e8   :  { %v888_v46 = vpack.c.bf16 %v887_v44, %v886_v42 }
 0x7ea   :  { %2338 = vmatmul.mubr.msk.bf16.vlgmr.msra.gmra.mxu0 %vm245_vm4, %v888_v46 }
 0x7eb   :  { %1321 = vmatprep.mubr.bf16.mxu0 %v2870_v0  ;;  %1298 = vmatpush1.bf16.msra.mxu0 %v2778_v30 }
 0x7ec   :  { %1299 = vmatprep.subr.bf16.mxu0 %v2783_v31 }
 0x7ef   :  { %1300 = vmatpush1.bf16.msra.mxu0 %v2781_v32 }
 0x7f0   :  { %1301 = vmatprep.subr.bf16.mxu0 %v2786_v33 }
 0x7f3   :  { %1302 = vmatpush1.bf16.msra.mxu0 %v2784_v34 }
 0x7f4   :  { %1303 = vmatprep.subr.bf16.mxu0 %v2789_v35 }
 0x7f7   :  { %1304 = vmatpush1.bf16.msra.mxu0 %v2787_v36 }
 0x7f8   :  { %2667 = vmatprep.subr.bf16.mxu0 %v2871_v20 }
 0x8aa   :  { %v986_v55 = vpop.f32.mrf.mxu0 }
 0x8ab   :  { %v987_v62 = vadd.f32 %v986_v55, %v902_v57  ;;  %v2357_v55 = vld [vmem:[%s3542_s15] ss:$0 sm:$0xff] }
 0x8ac   :  { %v988_v58 = vpop.f32.mrf.mxu0 }
 0x8ad   :  { %v989_v60 = vadd.f32 %v988_v58, %v906_v56  ;;  %v995_v7 = vmax.f32 %v987_v62, 0.0 }
 0x8ae   :  { %v990_v59 = vpop.f32.mrf.mxu0 }
 0x8af   :  { %v991_v61 = vadd.f32 %v990_v59, %v902_v57  ;;  %v996_v4 = vmax.f32 %v989_v60, 0.0  ;;  %v2366_v60 = vld [vmem:[%s3531_s5 + $0x2] sm:$0x3] }
 0x8b0   :  { %v992_v63 = vpop.f32.mrf.mxu0 }
 0x8b1   :  { %v993_v1 = vadd.f32 %v992_v63, %v906_v56  ;;  %v997_v2 = vmax.f32 %v991_v61, 0.0  ;;  %v1239_v61 = vrot.slane %v2366_v60, %v3061_v41 }
 0x8b3   :  { %v998_v6 = vmax.f32 %v993_v1, 0.0  ;;  %v999_v45 = vpack.c.bf16 %v997_v2, %v995_v7 }
 0x8b5   :  { %v1000_v38 = vpack.c.bf16 %v998_v6, %v996_v4 }
 0x8b7   :  { %1168 = vmatprep.mubr.bf16.mxu1 %v1000_v38  ;;  %v3325_v38 = vrot.slane %v2366_v60, %v3066_v43 }
 0x8b8   :  { %1169 = vmatmul.mubr.bf16.vlgmr.msra.gmra.mxu1 %v999_v45 }
 0x8b9   :  { %2681 = vmatprep.mubr.msk.bf16.mxu1 %vm2872_vm5, %v2871_v20 }
 0x978   :  { %v2529_v52 = vpop.f32.mrf.mxu1 }
 0x97a   :  { %v2530_v3 = vpop.f32.mrf.mxu1 }
 0x97b   :  { %v2531_v8 = vadd.f32 %v2530_v3, %v2529_v52 }
 0x97c   :  { %v2532_v9 = vpop.f32.mrf.mxu1 }
 0x97d   :  { %v1171_v10 = vadd.f32 %v2531_v8, %v2339_v37 }
 0x97e   :  { %v2533_v11 = vpop.f32.mrf.mxu1 }
 0x97f   :  { %v2534_v12 = vadd.f32 %v2533_v11, %v2532_v9  ;;  %v1177_v13 = vadd.f32 %v1171_v10, %v886_v42 }
 0x981   :  { %v1174_v14 = vadd.f32 %v2534_v12, %v2339_v37  ;;  %v1179_v15 = vsel %vm245_vm4, %v1177_v13, 0.0 }
 0x982   :  { %1180 = vadd.xlane.f32.xlu1 %v1179_v15 }
 0x983   :  { %v1178_v16 = vadd.f32 %v1174_v14, %v887_v44 }
 0x985   :  { %v1182_v17 = vsel %vm245_vm4, %v1178_v16, 0.0 }
 0x986   :  { %1183 = vadd.xlane.f32.xlu0 %v1182_v17 }
 0xa0b   :  { %v1181_v18 = vpop.xlane.xlu1 %1180 }
 0xa0c   :  { %v1185_v19 = vmul.f32 0.015625, %v1181_v18 }
 0xa0e   :  { %v1187_v21 = vsub.f32 %v1177_v13, %v1185_v19 }
 0xa0f   :  { %v1184_v22 = vpop.xlane.xlu0 %1183 }
 0xa10   :  { %v1186_v23 = vmul.f32 0.015625, %v1184_v22  ;;  %v1189_v24 = vmul.f32 %v1187_v21, %v1187_v21 }
 0xa12   :  { %v1188_v25 = vsub.f32 %v1178_v16, %v1186_v23  ;;  %v1191_v26 = vsel %vm245_vm4, %v1189_v24, 0.0 }
 0xa13   :  { %1192 = vadd.xlane.f32.xlu1 %v1191_v26 }
 0xa14   :  { %v1190_v27 = vmul.f32 %v1188_v25, %v1188_v25 }
 0xa16   :  { %v1194_v28 = vsel %vm245_vm4, %v1190_v27, 0.0 }
 0xa17   :  { %1195 = vadd.xlane.f32.xlu0 %v1194_v28 }
 0xa9c   :  { %v1193_v39 = vpop.xlane.xlu1 %1192 }
 0xa9d   :  { %v1197_v40 = vmul.f32 0.015625, %v1193_v39 }
 0xa9f   :  { %v1199_v42 = vadd.f32 1e-05, %v1197_v40 }
 0xaa0   :  { %v1196_v44 = vpop.xlane.xlu0 %1195 }
 0xaa1   :  { %2842 = vrsqrt.f32 %v1199_v42  ;;  %v1198_v46 = vmul.f32 0.015625, %v1196_v44 }
 0xaa3   :  { %v1200_v47 = vadd.f32 1e-05, %v1198_v46 }
 0xaa5   :  { %2844 = vrsqrt.f32 %v1200_v47 }
 0xaae   :  { %v2843_v48 = vpop.eup %2842 }
 0xaaf   :  { %v1203_v49 = vmul.f32 %v2843_v48, %v1187_v21 }
 0xab1   :  { %v1212_v54 = vmul.f32 %v2356_v50, %v1203_v49 }
 0xab2   :  { %v2845_v51 = vpop.eup %2844 }
 0xab3   :  { %v1204_v53 = vmul.f32 %v2845_v51, %v1188_v25  ;;  %v3305_v57 = vadd.f32 %v2357_v55, %v1212_v54 }
 0xab5   :  { %v1213_v56 = vmul.f32 %v2356_v50, %v1204_v53 }
 0xab7   :  { %v3307_v58 = vadd.f32 %v2357_v55, %v1213_v56 }
 0xab9   :  { %v1223_v59 = vpack.c.bf16 %v3307_v58, %v3305_v57 }
 0xabb   :  { %2375 = vmatmul.mubr.msk.bf16.vlgmr.msra.gmra.mxu0 %vm245_vm4, %v1223_v59 }
 0xabc   :  { %2669 = vmatprep.mubr.msk.bf16.mxu0 %vm2872_vm5, %v2871_v20 }
 0xb7b   :  { %v1323_v62 = vpop.f32.mrf.mxu0 }
 0xb7c   :  { %v1324_v63 = vadd.f32 %v1323_v62, %v1239_v61 }
 0xb7d   :  { %v1325_v1 = vpop.f32.mrf.mxu0 }
 0xb7e   :  { %v1332_v2 = vpack.c.bf16 %v1324_v63, %v1324_v63  ;;  %v1326_v37 = vadd.f32 %v1325_v1, %v3325_v38 }
 0xb7f   :  { %v1327_v4 = vpop.f32.mrf.mxu0 }
 0xb80   :  { %v1328_v6 = vadd.f32 %v1327_v4, %v1239_v61  ;;  %1446 = vrot.lane.b32.xlu0 %v1332_v2, %s2875_s26  ;;  %1335 = vrot.lane.b32.xlu1 %v1332_v2, %s2874_s19  ;;  %v3332_v10 = vpack.c.bf16 %v1326_v37, %v1326_v37 }
 0xb81   :  { %v1329_v17 = vpop.f32.mrf.mxu0 }
 0xb82   :  { %v1562_v7 = vpack.c.bf16 %v1328_v6, %v1328_v6  ;;  %v1401_v12 = vsel %vm98_vm0, %v3332_v10, 0 }
 0xb84   :  { %1676 = vrot.lane.b32.xlu0 %v1562_v7, %s2875_s26  ;;  %1444 = vrot.lane.b32.xlu1 %v1332_v2, %s2873_s2 }
 0xb88   :  { %1565 = vrot.lane.b32.xlu1 %v1562_v7, %s2874_s19 }
 0xb8c   :  { %1674 = vrot.lane.b32.xlu1 %v1562_v7, %s2873_s2 }
 0xbf2   :  { %v1447_v45 = vpop.permute.xlu0 %1446  ;;  %v1336_v52 = vpop.permute.xlu1 %1335 }
 0xbf3   :  { %v1452_v3 = vsel %vm297_vm6, %v1447_v45, 0  ;;  %v1341_v8 = vsel %vm297_vm6, %v1336_v52, 0 }
 0xbf4   :  { %2668 = vmatpush3.bf16.xpose.msra.mxu0 %v1341_v8  ;;  %2680 = vmatpush3.bf16.xpose.msra.mxu1 %v1452_v3 }
 0xbf5   :  { %2673 = vmatprep.subr.bf16.mxu0 %v2871_v20  ;;  %2691 = vmatprep.subr.bf16.mxu1 %v2871_v20 }
 0xbf6   :  { %v1445_v9 = vpop.permute.xlu1 %1444  ;;  %v1677_v14 = vpop.permute.xlu0 %1676 }
 0xbf7   :  { %v1682_v15 = vsel %vm297_vm6, %v1677_v14, 0 }
 0xbfa   :  { %v1566_v11 = vpop.permute.xlu1 %1565 }
 0xbfb   :  { %v1571_v13 = vsel %vm297_vm6, %v1566_v11, 0  ;;  %2670 = vmatmul.mubr.msk.bf16.vlgmr.msra.gmra.mxu0 %vm297_vm6, %v1332_v2  ;;  %2682 = vmatmul.mubr.msk.bf16.vlgmr.msra.gmra.mxu1 %vm297_vm6, %v1445_v9  ;;  %v1330_v9 = vadd.f32 %v1329_v17, %v3325_v38 }
 0xbfc   :  { %2674 = vmatpush3.bf16.msra.mxu0 %v1401_v12  ;;  %2692 = vmatpush3.bf16.xpose.msra.mxu1 %v1571_v13 }
 0xbfd   :  { %2693 = vmatprep.mubr.msk.bf16.mxu1 %vm2872_vm5, %v2871_v20  ;;  %2703 = vmatprep.subr.bf16.mxu1 %v2871_v20  ;;  %v1563_v11 = vpack.c.bf16 %v1330_v9, %v1330_v9 }
 0xbfe   :  { %2675 = vmatprep.mubr.msk.bf16.mxu0 %vm2872_vm5, %v2871_v20  ;;  %2685 = vmatprep.subr.bf16.mxu0 %v2871_v20  ;;  %v1675_v16 = vpop.permute.xlu1 %1674 }
 0xc03   :  { %2694 = vmatmul.mubr.msk.bf16.vlgmr.msra.gmra.mxu1 %vm297_vm6, %v1562_v7 }
 0xc04   :  { %2704 = vmatpush3.bf16.xpose.msra.mxu1 %v1682_v15  ;;  %2705 = vmatprep.mubr.msk.bf16.mxu1 %vm2872_vm5, %v2871_v20 }
 0xc05   :  { %2715 = vmatprep.subr.bf16.mxu1 %v2871_v20 }
 0xc0b   :  { %2706 = vmatmul.mubr.msk.bf16.vlgmr.msra.gmra.mxu1 %vm297_vm6, %v1675_v16 }
 0xc0c   :  { %2723 = vmatprep.mubr.msk.bf16.mxu1 %vm2872_vm5, %v2871_v20 }
 0xcbb   :  { %v1377_v18 = vpop.f32.mrf.mxu0  ;;  %v1488_v19 = vpop.f32.mrf.mxu1 }
 0xcbc   :  { %v1383_v21 = vmul.f32 0.17677669, %v1377_v18  ;;  %v1494_v22 = vmul.f32 0.17677669, %v1488_v19 }
 0xcbd   :  { %v2671_v23 = vpop.f32.mrf.mxu0  ;;  %v2683_v24 = vpop.f32.mrf.mxu1 }
 0xcbe   :  { %v1384_v25 = vadd.f32 %v1383_v21, %v3110_v5  ;;  %v1495_v26 = vadd.f32 %v1494_v22, %v3110_v5  ;;  %v1631_v24 = vsel %vm98_vm0, %v1563_v11, 0 }
 0xcbf   :  { %v1380_v27 = vpop.f32.mrf.mxu0  ;;  %v1491_v28 = vpop.f32.mrf.mxu1 }
 0xcc0   :  { %v1385_v29 = vsel %vm346_vm7, %v1384_v25, -inf  ;;  %v1496_v30 = vsel %vm346_vm7, %v1495_v26, -inf }
 0xcc1   :  { %1386 = vmax.xlane.f32.xlu0 %v1385_v29  ;;  %v2672_v31 = vpop.f32.mrf.mxu0  ;;  %1497 = vmax.xlane.f32.xlu1 %v1496_v30  ;;  %v2684_v32 = vpop.f32.mrf.mxu1 }
 0xcc2   :  { %v2790_v32 = vld [vmem:[%s3533_s6 + $0x38] sm:$0xff]  }
 0xcc3   :  { %v1607_v33 = vpop.f32.mrf.mxu1  ;;  %2716 = vmatpush3.bf16.msra.mxu1 %v2790_v32  ;;  %v2814_v32 = vld [vmem:[%s3536_s12 + $0xd8] sm:$0xff]  }
 0xcc4   :  { %v1613_v34 = vmul.f32 0.17677669, %v1607_v33  ;;  %v2791_v33 = vld [vmem:[%s3533_s6 + $0x30] sm:$0xff]   ;;  %2717 = vmatprep.subr.bf16.mxu1 %v2871_v20 }
 0xcc5   :  { %v2695_v35 = vpop.f32.mrf.mxu1 }
 0xcc6   :  { %v1614_v36 = vadd.f32 %v1613_v34, %v3110_v5 }
 0xcc7   :  { %v1610_v39 = vpop.f32.mrf.mxu1  ;;  %2718 = vmatpush3.bf16.msra.mxu1 %v2791_v33  ;;  %v2815_v33 = vld [vmem:[%s3536_s12 + $0x98] sm:$0xff]  }
 0xcc8   :  { %v1615_v40 = vsel %vm346_vm7, %v1614_v36, -inf  ;;  %2719 = vmatprep.subr.bf16.mxu1 %v2871_v20 }
 0xcc9   :  { %1616 = vmax.xlane.f32.xlu0 %v1615_v40  ;;  %v2696_v42 = vpop.f32.mrf.mxu1 }
 0xccb   :  { %v1718_v44 = vpop.f32.mrf.mxu1 }
 0xccc   :  { %v1724_v46 = vmul.f32 0.17677669, %v1718_v44  ;;  %v2792_v44 = vld [vmem:[%s3533_s6 + $0x28] sm:$0xff]  }
 0xccd   :  { %v2707_v47 = vpop.f32.mrf.mxu1  ;;  %2720 = vmatpush3.bf16.msra.mxu1 %v2792_v44 }
 0xcce   :  { %v1725_v48 = vadd.f32 %v1724_v46, %v3110_v5  ;;  %v2793_v47 = vld [vmem:[%s3533_s6 + $0x20] sm:$0xff]   ;;  %2721 = vmatprep.subr.bf16.mxu1 %v2871_v20 }
 0xccf   :  { %v1721_v49 = vpop.f32.mrf.mxu1 }
 0xcd0   :  { %v1726_v50 = vsel %vm346_vm7, %v1725_v48, -inf }
 0xcd1   :  { %1727 = vmax.xlane.f32.xlu0 %v1726_v50  ;;  %v2708_v51 = vpop.f32.mrf.mxu1  ;;  %2722 = vmatpush3.bf16.msra.mxu1 %v2793_v47 }
 0xd4a   :  { %v1387_v53 = vpop.xlane.xlu0 %1386  ;;  %v1498_v54 = vpop.xlane.xlu1 %1497 }
 0xd4b   :  { %v1388_v55 = vsub.f32 %v1384_v25, %v1387_v53  ;;  %v1499_v56 = vsub.f32 %v1495_v26, %v1498_v54 }
 0xd4d   :  { %v1389_v59 = vmul.f32 1.442695, %v1388_v55  ;;  %v1500_v60 = vmul.f32 1.442695, %v1499_v56 }
 0xd4f   :  { %2846 = vpow2.f32 %v1389_v59 }
 0xd50   :  { %2848 = vpow2.f32 %v1500_v60 }
 0xd52   :  { %v1617_v61 = vpop.xlane.xlu0 %1616 }
 0xd53   :  { %v1618_v62 = vsub.f32 %v1614_v36, %v1617_v61 }
 0xd55   :  { %v1619_v63 = vmul.f32 1.442695, %v1618_v62 }
 0xd57   :  { %2850 = vpow2.f32 %v1619_v63  ;;  %v2393_v63 = vld [vmem:[%s3534_s7 + $0x1] ss:$0 sm:$0xff] }
 0xd5a   :  { %v1728_v1 = vpop.xlane.xlu0 %1727 }
 0xd5b   :  { %v1729_v2 = vsub.f32 %v1725_v48, %v1728_v1 }
 0xd5c   :  { %v2847_v5 = vpop.eup %2846 }
 0xd5d   :  { %v2849_v4 = vpop.eup %2848  ;;  %v1730_v6 = vmul.f32 1.442695, %v1729_v2  ;;  %v1391_v7 = vsel %vm346_vm7, %v2847_v5, 0.0 }
 0xd5e   :  { %1392 = vadd.xlane.f32.xlu1 %v1391_v7  ;;  %v1502_v45 = vsel %vm346_vm7, %v2849_v4, 0.0 }
 0xd5f   :  { %2852 = vpow2.f32 %v1730_v6  ;;  %1503 = vadd.xlane.f32.xlu0 %v1502_v45 }
 0xd64   :  { %v2851_v52 = vpop.eup %2850 }
 0xd65   :  { %v1621_v37 = vsel %vm346_vm7, %v2851_v52, 0.0 }
 0xd66   :  { %1622 = vadd.xlane.f32.xlu1 %v1621_v37 }
 0xd6c   :  { %v2853_v3 = vpop.eup %2852 }
 0xd6d   :  { %v1732_v8 = vsel %vm346_vm7, %v2853_v3, 0.0 }
 0xd6e   :  { %1733 = vadd.xlane.f32.xlu0 %v1732_v8 }
 0xd77   :  { %1509 = vrot.lane.b32.xlu1 %v3332_v10, %s2873_s2 }
 0xd84   :  { %1739 = vrot.lane.b32.xlu0 %v1563_v11, %s2873_s2 }
 0xde7   :  { %v1393_v12 = vpop.xlane.xlu1 %1392 }
 0xde8   :  { %2854 = vrcp.f32 %v1393_v12  ;;  %v1504_v13 = vpop.xlane.xlu0 %1503 }
 0xde9   :  { %2856 = vrcp.f32 %v1504_v13 }
 0xdef   :  { %v1623_v14 = vpop.xlane.xlu1 %1622 }
 0xdf0   :  { %2858 = vrcp.f32 %v1623_v14 }
 0xdf3   :  { %v1510_v18 = vpop.permute.xlu1 %1509 }
 0xdf4   :  { %v1515_v23 = vsel %vm98_vm0, %v1510_v18, 0 }
 0xdf5   :  { %v2855_v15 = vpop.eup %2854 }
 0xdf6   :  { %v1395_v16 = vmul.f32 %v2855_v15, %v2847_v5  ;;  %v2857_v21 = vpop.eup %2856 }
 0xdf7   :  { %v1734_v22 = vpop.xlane.xlu0 %1733  ;;  %v1506_v38 = vmul.f32 %v2857_v21, %v2849_v4  ;;  %v2799_v21 = vld [vmem:[%s3535_s10 + $0x64] ss:$8 sps:$4 sm:$0xff]  }
 0xdf8   :  { %v1396_v19 = vpack.c.bf16 %v1395_v16, %v1395_v16  ;;  %2860 = vrcp.f32 %v1734_v22  ;;  %v2797_v22 = vld [vmem:[%s3535_s10 + $0x60] ss:$8 sps:$4 sm:$0xff]  }
 0xdf9   :  { %v1507_v10 = vpack.c.bf16 %v1506_v38, %v1506_v38  ;;  %v2800_v38 = vld [vmem:[%s3535_s10 + $0x50] ss:$8 sps:$4 sm:$0xff]  }
 0xdfa   :  { %2676 = vmatmul.mubr.msk.bf16.vlgmr.msra.gmra.mxu0 %vm346_vm7, %v1396_v19  ;;  %v2794_v19 = vld [vmem:[%s3535_s10 + $0x70] ss:$8 sps:$4 sm:$0xff]  }
 0xdfb   :  { %2686 = vmatpush3.bf16.msra.mxu0 %v1515_v23  ;;  %2687 = vmatprep.mubr.msk.bf16.mxu0 %vm2872_vm5, %v2871_v20  ;;  %v1740_v26 = vpop.permute.xlu0 %1739  ;;  %v2802_v23 = vld [vmem:[%s3535_s10 + $0x54] ss:$8 sps:$4 sm:$0xff]  }
 0xdfc   :  { %2697 = vmatprep.subr.bf16.mxu0 %v2871_v20  ;;  %v1745_v29 = vsel %vm98_vm0, %v1740_v26, 0  ;;  %v2808_v26 = vld [vmem:[%s3536_s12 + $0xf0] sm:$0xff]  }
 0xdfd   :  { %v2859_v17 = vpop.eup %2858 }
 0xdfe   :  { %v1625_v25 = vmul.f32 %v2859_v17, %v2851_v52  ;;  %v2803_v17 = vld [vmem:[%s3535_s10 + $0x40] ss:$8 sps:$4 sm:$0xff]  }
 0xe00   :  { %v1626_v27 = vpack.c.bf16 %v1625_v25, %v1625_v25  ;;  %v2807_v25 = vld [vmem:[%s3536_s12 + $0xb8] sm:$0xff]  }
 0xe02   :  { %2688 = vmatmul.mubr.msk.bf16.vlgmr.msra.gmra.mxu0 %vm346_vm7, %v1507_v10  ;;  %v2805_v10 = vld [vmem:[%s3535_s10 + $0x44] ss:$8 sps:$4 sm:$0xff]  }
 0xe03   :  { %2698 = vmatpush3.bf16.msra.mxu0 %v1631_v24  ;;  %2699 = vmatprep.mubr.msk.bf16.mxu0 %vm2872_vm5, %v2871_v20  ;;  %v2806_v24 = vld [vmem:[%s3536_s12 + $0xf8] sm:$0xff]  }
 0xe04   :  { %2709 = vmatprep.subr.bf16.mxu0 %v2871_v20  ;;  %2556 = vmatprep.subr.bf16.mxu1 %v2806_v24 }
 0xe05   :  { %v2861_v28 = vpop.eup %2860 }
 0xe06   :  { %v1736_v30 = vmul.f32 %v2861_v28, %v2853_v3  ;;  %v2810_v28 = vld [vmem:[%s3536_s12 + $0xe8] sm:$0xff]  }
 0xe08   :  { %v1737_v31 = vpack.c.bf16 %v1736_v30, %v1736_v30  ;;  %v2812_v30 = vld [vmem:[%s3536_s12 + $0xe0] sm:$0xff]  }
 0xe0a   :  { %2700 = vmatmul.mubr.msk.bf16.vlgmr.msra.gmra.mxu0 %vm346_vm7, %v1626_v27  ;;  %v2809_v27 = vld [vmem:[%s3536_s12 + $0xb0] sm:$0xff]  }
 0xe0b   :  { %2710 = vmatpush3.bf16.msra.mxu0 %v1745_v29  ;;  %2711 = vmatprep.mubr.msk.bf16.mxu0 %vm2872_vm5, %v2871_v20  ;;  %v2811_v29 = vld [vmem:[%s3536_s12 + $0xa8] sm:$0xff]  }
 0xe12   :  { %2712 = vmatmul.mubr.msk.bf16.vlgmr.msra.gmra.mxu0 %vm346_vm7, %v1737_v31  ;;  %v2813_v31 = vld [vmem:[%s3536_s12 + $0xa0] sm:$0xff]  }
 0xe13   :  { %2026 = vmatprep.mubr.bf16.mxu0 %v2870_v0 }
 0xeba   :  { %v1437_v34 = vpop.f32.mrf.mxu0 }
 0xebb   :  { %1443 = vst.msk [vmem:[#allocation2] sm:$0xff] %vm297_vm6, %v1437_v34 }
 0xebc   :  { %v2677_v35 = vpop.f32.mrf.mxu0 }
 0xebe   :  { %v1440_v36 = vpop.f32.mrf.mxu0 }
 0xec0   :  { %v2678_v0 = vpop.f32.mrf.mxu0 }
 0xec2   :  { %v1551_v39 = vpop.f32.mrf.mxu0 }
 0xec3   :  { %1558 = vrot.lane.b32.xlu1 %v1551_v39, %s2875_s26 }
 0xec4   :  { %v2689_v40 = vpop.f32.mrf.mxu0 }
 0xec6   :  { %v1554_v42 = vpop.f32.mrf.mxu0 }
 0xec8   :  { %v2690_v46 = vpop.f32.mrf.mxu0 }
 0xec9   :  { %v2400_v46 = vld [vmem:[%s3537_s8 + $0x1] ss:$0 sm:$0xff] }
 0xeca   :  { %v1667_v48 = vpop.f32.mrf.mxu0 }
 0xecb   :  { %1673 = vst.msk [vmem:[#allocation2 + $0x8] sm:$0xff] %vm297_vm6, %v1667_v48 }
 0xecc   :  { %v2701_v49 = vpop.f32.mrf.mxu0 }
 0xece   :  { %v1670_v50 = vpop.f32.mrf.mxu0 }
 0xecf   :  { %v2402_v50 = vld [vmem:[%s3538_s9 + $0x1] ss:$0 sm:$0xff] }
 0xed0   :  { %v2702_v51 = vpop.f32.mrf.mxu0 }
 0xed2   :  { %v1781_v53 = vpop.f32.mrf.mxu0 }
 0xed3   :  { %1788 = vrot.lane.b32.xlu1 %v1781_v53, %s2875_s26 }
 0xed4   :  { %v2713_v54 = vpop.f32.mrf.mxu0 }
 0xed6   :  { %v1784_v55 = vpop.f32.mrf.mxu0 }
 0xed8   :  { %v2714_v56 = vpop.f32.mrf.mxu0 }
 0xed9   :  { %v2816_v56 = vld [vmem:[%s3536_s12 + $0xd0] sm:$0xff]  }
 0xf35   :  { %v1559_v59 = vpop.permute.xlu1 %1558 }
 0xf36   :  { %1561 = vst.msk [vmem:[#allocation2] sm:$0xff] %vm523_vm8, %v1559_v59  ;;  %v2817_v59 = vld [vmem:[%s3536_s12 + $0x90] sm:$0xff]  }
 0xf3d   :  { %v1792_v20 = vld [vmem:[#allocation2] sm:$0xff] }
 0xf45   :  { %v1789_v60 = vpop.permute.xlu1 %1788 }
 0xf46   :  { %1791 = vst.msk [vmem:[#allocation2 + $0x8] sm:$0xff] %vm523_vm8, %v1789_v60  ;;  %v2818_v60 = vld [vmem:[%s3536_s12 + $0xc8] sm:$0xff]  }
 0xf4d   :  { %v1793_v61 = vld [vmem:[#allocation2 + $0x8] sm:$0xff] }
 0xf4e   :  { %v1794_v62 = vpack.c.bf16 %v1793_v61, %v1792_v20  ;;  %v2819_v20 = vld [vmem:[%s3536_s12 + $0x88] sm:$0xff]   ;;  %v2820_v61 = vld [vmem:[%s3536_s12 + $0xc0] sm:$0xff]  }
 0xf50   :  { %2724 = vmatmul.mubr.msk.bf16.vlgmr.msra.gmra.mxu1 %vm245_vm4, %v1794_v62  ;;  %v2821_v62 = vld [vmem:[%s3536_s12 + $0x80] sm:$0xff]  }
 0xf51   :  { %2557 = vmatpush3.bf16.msra.mxu1 %v2807_v25 }
 0xf52   :  { %2558 = vmatprep.subr.bf16.mxu1 %v2808_v26 }
 0xf55   :  { %2559 = vmatpush3.bf16.msra.mxu1 %v2809_v27 }
 0xf56   :  { %2560 = vmatprep.subr.bf16.mxu1 %v2810_v28 }
 0xf59   :  { %2561 = vmatpush3.bf16.msra.mxu1 %v2811_v29 }
 0xf5a   :  { %2562 = vmatprep.subr.bf16.mxu1 %v2812_v30 }
 0xf5d   :  { %2563 = vmatpush3.bf16.msra.mxu1 %v2813_v31 }
 0xf5e   :  { %2564 = vmatprep.subr.bf16.mxu1 %v2814_v32 }
 0xf61   :  { %2565 = vmatpush3.bf16.msra.mxu1 %v2815_v33  ;;  %v23_v33 = vstv %s3543_s17 }
 0xf62   :  { %2566 = vmatprep.subr.bf16.mxu1 %v2816_v56  ;;  %24 = vst [vmem:[#allocation3] sm:$0x1] %v23_v33 }
 0xf65   :  { %2567 = vmatpush3.bf16.msra.mxu1 %v2817_v59 }
 0xf66   :  { %2568 = vmatprep.subr.bf16.mxu1 %v2818_v60 }
 0xf69   :  { %2569 = vmatpush3.bf16.msra.mxu1 %v2819_v20 }
 0xf6a   :  { %2570 = vmatprep.subr.bf16.mxu1 %v2820_v61  ;;  %v2476_v61 = vld [vmem:[#allocation3] ss:$0 sm:$0xff] }
 0xf6d   :  { %2571 = vmatpush3.bf16.msra.mxu1 %v2821_v62 }
0x1010   :  { %v1873_v1 = vpop.f32.mrf.mxu1 }
0x1011   :  { %v1874_v2 = vadd.f32 %v2393_v63, %v1873_v1 }
0x1012   :  { %v2725_v5 = vpop.f32.mrf.mxu1 }
0x1013   :  { %v1880_v4 = vadd.f32 %v1874_v2, %v3305_v57 }
0x1014   :  { %v1876_v6 = vpop.f32.mrf.mxu1 }
0x1015   :  { %v1877_v7 = vadd.f32 %v2393_v63, %v1876_v6  ;;  %v1882_v45 = vsel %vm245_vm4, %v1880_v4, 0.0  ;;  %v2411_v63 = vld [vmem:[%s3539_s11 + $0x2] sm:$0x3] }
0x1016   :  { %1883 = vadd.xlane.f32.xlu0 %v1882_v45  ;;  %v2726_v52 = vpop.f32.mrf.mxu1  ;;  %v1948_v2 = vrot.slane %v2411_v63, %v3066_v43  ;;  %v1944_v5 = vrot.slane %v2411_v63, %v3061_v41  ;;  %v2454_v41 = vld [vmem:[%s3540_s13 + $0x1] ss:$0 sm:$0xff] }
0x1017   :  { %v1881_v37 = vadd.f32 %v1877_v7, %v3307_v58  ;;  %v2796_v58 = vld [vmem:[%s3535_s10 + $0x74] ss:$8 sps:$4 sm:$0xff]  }
0x1018   :  { %2002 = vmatprep.subr.bf16.mxu0 %v2796_v58 }
0x1019   :  { %v1885_v3 = vsel %vm245_vm4, %v1881_v37, 0.0  ;;  %2003 = vmatpush1.bf16.msra.mxu0 %v2794_v19 }
0x101a   :  { %1886 = vadd.xlane.f32.xlu1 %v1885_v3  ;;  %2004 = vmatprep.subr.bf16.mxu0 %v2799_v21 }
0x101d   :  { %2005 = vmatpush1.bf16.msra.mxu0 %v2797_v22 }
0x101e   :  { %2006 = vmatprep.subr.bf16.mxu0 %v2802_v23 }
0x1021   :  { %2007 = vmatpush1.bf16.msra.mxu0 %v2800_v38 }
0x1022   :  { %2008 = vmatprep.subr.bf16.mxu0 %v2805_v10 }
0x1025   :  { %2009 = vmatpush1.bf16.msra.mxu0 %v2803_v17 }
0x109f   :  { %v1884_v8 = vpop.xlane.xlu0 %1883 }
0x10a0   :  { %v1888_v9 = vmul.f32 0.015625, %v1884_v8 }
0x10a2   :  { %v1890_v11 = vsub.f32 %v1880_v4, %v1888_v9 }
0x10a3   :  { %v1887_v12 = vpop.xlane.xlu1 %1886 }
0x10a4   :  { %v1889_v13 = vmul.f32 0.015625, %v1887_v12  ;;  %v1892_v14 = vmul.f32 %v1890_v11, %v1890_v11 }
0x10a6   :  { %v1891_v15 = vsub.f32 %v1881_v37, %v1889_v13  ;;  %v1894_v57 = vsel %vm245_vm4, %v1892_v14, 0.0 }
0x10a7   :  { %1895 = vadd.xlane.f32.xlu0 %v1894_v57 }
0x10a8   :  { %v1893_v16 = vmul.f32 %v1891_v15, %v1891_v15 }
0x10aa   :  { %v1897_v18 = vsel %vm245_vm4, %v1893_v16, 0.0 }
0x10ab   :  { %1898 = vadd.xlane.f32.xlu0 %v1897_v18 }
0x1130   :  { %v1896_v34 = vpop.xlane.xlu0 %1895 }
0x1131   :  { %v1900_v35 = vmul.f32 0.015625, %v1896_v34 }
0x1133   :  { %v1902_v36 = vadd.f32 1e-05, %v1900_v35 }
0x1134   :  { %v1899_v0 = vpop.xlane.xlu0 %1898 }
0x1135   :  { %2862 = vrsqrt.f32 %v1902_v36  ;;  %v1901_v39 = vmul.f32 0.015625, %v1899_v0 }
0x1137   :  { %v1903_v40 = vadd.f32 1e-05, %v1901_v39 }
0x1139   :  { %2864 = vrsqrt.f32 %v1903_v40 }
0x1142   :  { %v2863_v42 = vpop.eup %2862 }
0x1143   :  { %v1906_v44 = vmul.f32 %v2863_v42, %v1890_v11 }
0x1145   :  { %v1916_v49 = vmul.f32 %v2400_v46, %v1906_v44  ;;  %v2472_v44 = vld [vmem:[%s3541_s14 + $0x1] ss:$0 sm:$0xff] }
0x1146   :  { %v2865_v47 = vpop.eup %2864 }
0x1147   :  { %v1907_v48 = vmul.f32 %v2865_v47, %v1891_v15  ;;  %v1926_v53 = vadd.f32 %v2402_v50, %v1916_v49  ;;  %v2474_v47 = vld [vmem:[%s3542_s15 + $0x1] ss:$0 sm:$0xff] }
0x1149   :  { %v1917_v51 = vmul.f32 %v2400_v46, %v1907_v48 }
0x114b   :  { %v1927_v54 = vadd.f32 %v2402_v50, %v1917_v51  ;;  %v2475_v50 = vld [vmem:[%s3544_s16] ss:$0 sm:$0xff] }
0x114d   :  { %v1928_v55 = vpack.c.bf16 %v1927_v54, %v1926_v53 }
0x114f   :  { %2420 = vmatmul.mubr.msk.bf16.vlgmr.msra.gmra.mxu0 %vm245_vm4, %v1928_v55 }
0x120f   :  { %v2028_v1 = vpop.f32.mrf.mxu0 }
0x1210   :  { %v2029_v52 = vadd.f32 %v2028_v1, %v1944_v5 }
0x1211   :  { %v2030_v4 = vpop.f32.mrf.mxu0 }
0x1212   :  { %v2031_v7 = vadd.f32 %v2030_v4, %v1948_v2  ;;  %v2037_v12 = vmax.f32 %v2029_v52, 0.0 }
0x1213   :  { %v2032_v6 = vpop.f32.mrf.mxu0 }
0x1214   :  { %v2033_v45 = vadd.f32 %v2032_v6, %v1944_v5  ;;  %v2038_v9 = vmax.f32 %v2031_v7, 0.0 }
0x1215   :  { %v2034_v37 = vpop.f32.mrf.mxu0 }
0x1216   :  { %v2035_v3 = vadd.f32 %v2034_v37, %v1948_v2  ;;  %v2039_v8 = vmax.f32 %v2033_v45, 0.0 }
0x1218   :  { %v2040_v11 = vmax.f32 %v2035_v3, 0.0  ;;  %v2041_v14 = vpack.c.bf16 %v2039_v8, %v2037_v12 }
0x121a   :  { %v2042_v13 = vpack.c.bf16 %v2040_v11, %v2038_v9 }
0x121c   :  { %2212 = vmatprep.mubr.bf16.mxu1 %v2042_v13 }
0x121d   :  { %2213 = vmatmul.mubr.bf16.vlgmr.msra.gmra.mxu1 %v2041_v14 }
0x12dd   :  { %v2572_v15 = vpop.f32.mrf.mxu1 }
0x12df   :  { %v2573_v43 = vpop.f32.mrf.mxu1 }
0x12e0   :  { %v2574_v57 = vadd.f32 %v2573_v43, %v2572_v15 }
0x12e1   :  { %v2575_v16 = vpop.f32.mrf.mxu1 }
0x12e2   :  { %v2215_v18 = vadd.f32 %v2574_v57, %v2454_v41 }
0x12e3   :  { %v2576_v58 = vpop.f32.mrf.mxu1 }
0x12e4   :  { %v2577_v19 = vadd.f32 %v2576_v58, %v2575_v16  ;;  %v2221_v21 = vadd.f32 %v2215_v18, %v1926_v53 }
0x12e6   :  { %v2218_v22 = vadd.f32 %v2577_v19, %v2454_v41  ;;  %v2223_v23 = vsel %vm245_vm4, %v2221_v21, 0.0 }
0x12e7   :  { %2224 = vadd.xlane.f32.xlu1 %v2223_v23 }
0x12e8   :  { %v2222_v38 = vadd.f32 %v2218_v22, %v1927_v54 }
0x12ea   :  { %v2226_v10 = vsel %vm245_vm4, %v2222_v38, 0.0 }
0x12eb   :  { %2227 = vadd.xlane.f32.xlu0 %v2226_v10 }
0x1370   :  { %v2225_v17 = vpop.xlane.xlu1 %2224 }
0x1371   :  { %v2229_v24 = vmul.f32 0.015625, %v2225_v17 }
0x1373   :  { %v2231_v25 = vsub.f32 %v2221_v21, %v2229_v24 }
0x1374   :  { %v2228_v26 = vpop.xlane.xlu0 %2227 }
0x1375   :  { %v2230_v27 = vmul.f32 0.015625, %v2228_v26  ;;  %v2233_v28 = vmul.f32 %v2231_v25, %v2231_v25 }
0x1377   :  { %v2232_v29 = vsub.f32 %v2222_v38, %v2230_v27  ;;  %v2235_v30 = vsel %vm245_vm4, %v2233_v28, 0.0 }
0x1378   :  { %2236 = vadd.xlane.f32.xlu1 %v2235_v30 }
0x1379   :  { %v2234_v31 = vmul.f32 %v2232_v29, %v2232_v29 }
0x137b   :  { %v2238_v32 = vsel %vm245_vm4, %v2234_v31, 0.0 }
0x137c   :  { %2239 = vadd.xlane.f32.xlu0 %v2238_v32 }
0x1401   :  { %v2237_v34 = vpop.xlane.xlu1 %2236 }
0x1402   :  { %v2241_v35 = vmul.f32 0.015625, %v2237_v34 }
0x1404   :  { %v2243_v36 = vadd.f32 1e-05, %v2241_v35 }
0x1405   :  { %v2240_v0 = vpop.xlane.xlu0 %2239 }
0x1406   :  { %2866 = vrsqrt.f32 %v2243_v36  ;;  %v2242_v39 = vmul.f32 0.015625, %v2240_v0 }
0x1408   :  { %v2244_v40 = vadd.f32 1e-05, %v2242_v39 }
0x140a   :  { %2868 = vrsqrt.f32 %v2244_v40 }
0x1413   :  { %v2867_v42 = vpop.eup %2866 }
0x1414   :  { %v2247_v46 = vmul.f32 %v2867_v42, %v2231_v25 }
0x1416   :  { %v2257_v48 = vmul.f32 %v2472_v44, %v2247_v46 }
0x1417   :  { %v2869_v49 = vpop.eup %2868 }
0x1418   :  { %v2267_v51 = vadd.f32 %v2474_v47, %v2257_v48  ;;  %v2248_v53 = vmul.f32 %v2869_v49, %v2232_v29 }
0x141a   :  { %v2276_v54 = vmul.f32 %v2475_v50, %v2267_v51  ;;  %v2258_v55 = vmul.f32 %v2472_v44, %v2248_v53 }
0x141c   :  { %v2278_v56 = vsel %vm245_vm4, %v2276_v54, 0.0  ;;  %v2268_v59 = vadd.f32 %v2474_v47, %v2258_v55 }
0x141d   :  { %2279 = vadd.xlane.f32.xlu1 %v2278_v56 }
0x141e   :  { %v2277_v60 = vmul.f32 %v2475_v50, %v2268_v59 }
0x1420   :  { %v2281_v20 = vsel %vm245_vm4, %v2277_v60, 0.0 }
0x1421   :  { %2282 = vadd.xlane.f32.xlu0 %v2281_v20 }
0x14a6   :  { %v2280_v62 = vpop.xlane.xlu1 %2279 }
0x14a7   :  { %v2291_v63 = vadd.f32 %v2476_v61, %v2280_v62 }
0x14a9   :  { %2294 = vst.msk [vmem:[%s3545_s18] sm:$0xff] %vm2293_vm9, %v2291_v63 }
0x14aa   :  { %v2283_v1 = vpop.xlane.xlu0 %2282 }
0x14ab   :  { %v2292_v2 = vadd.f32 %v2476_v61, %v2283_v1 }
0x14ad   :  { %2295 = vst.msk [vmem:[%s3545_s18 + $0x8] sm:$0xff] %vm2293_vm9, %v2292_v2 }

</bundles_post_ra>
